<compile_context>
chip_gen: v6e
topology: v6e:2x2x1
jax: 0.10.0
libtpu: 0.0.40
codegen_flags: <defaults>
</compile_context>

<pallas_src>
import functools

import jax
import jax.numpy as jnp
from jax.experimental import pallas as pl
from jax.experimental.pallas import tpu as pltpu

LEAKY_SLOPE = 0.01   # F.leaky_relu default
GAT_SLOPE = 0.2      # GATConv attention LeakyReLU slope
BN_EPS = 1e-5
LANE = 128           # lane-dense output width
NEG = -1e30          # additive softmax mask (rows always have a self loop)


# ----------------------------- fused Pallas kernel --------------------------

def _fused_gcn_kernel(a_ref, nm_ref, x_ref,
                      w1_ref, b1_ref, r1w_ref, r1b_ref,
                      w2c_ref, attm_ref, s2_ref, b2_ref, r2b_ref,
                      w3c_ref, b3_ref, r3b_ref,
                      w4p_ref, b4p_ref,
                      o_ref, *, heads, head_dim):
    a = a_ref[...]            # normalized adjacency (D^-1/2 Â D^-1/2), [N, N]
    neg_mask = nm_ref[...]    # additive mask: 0 where edge/self-loop, -1e30 else
    x = x_ref[...]            # node features, [N, IN_C]

    def leaky(v):
        return jnp.where(v > 0, v, LEAKY_SLOPE * v)

    # ---- layer 1: GCN (BN1 folded) -> LeakyReLU -> + Linear residual ------
    # in_c < hid: contract the NxN matmul against the narrow feature width.
    ax = jnp.dot(a, x, preferred_element_type=jnp.float32)           # [N, in_c]
    h1 = jnp.dot(ax, w1_ref[...], preferred_element_type=jnp.float32) + b1_ref[...]
    x1 = leaky(h1) + jnp.dot(x, r1w_ref[...],
                             preferred_element_type=jnp.float32) + r1b_ref[...]

    # ---- layer 2: GAT (heads, concat=False => mean), BN2 as post-affine ----
    hd = heads * head_dim
    zc = jnp.dot(x1, w2c_ref[...], preferred_element_type=jnp.float32)  # [N, HD+h4]
    z_all = zc[:, :hd]                                                  # GAT features
    res2 = zc[:, hd:]                                                   # residual x1@res2_w
    # per-head (a_src . z), (a_dst . z) via one MXU matmul -> [N, 2H]
    a_all = jnp.dot(z_all, attm_ref[...], preferred_element_type=jnp.float32)
    a_src_t = a_all[:, :heads].T                                        # [H, N], one XLU relayout
    acc = None
    for h in range(heads):                                   # static unroll
        z = z_all[:, h * head_dim:(h + 1) * head_dim]        # [N, D]
        a_s = a_src_t[h:h + 1, :]                            # [1, N] (source j)
        a_d = a_all[:, heads + h:heads + h + 1]              # [N, 1] (dest i)
        e = a_d + a_s                                        # e[i, j]
        e = jnp.where(e > 0, e, GAT_SLOPE * e) + neg_mask
        e = e - jnp.max(e, axis=1, keepdims=True)
        p = jnp.exp(e)                                       # masked entries -> 0
        p = p * pl.reciprocal(jnp.sum(p, axis=1, keepdims=True), approx=True)
        pz = jnp.dot(p, z, preferred_element_type=jnp.float32)
        acc = pz if acc is None else acc + pz
    # s2 already contains BN scale * (1/heads); b2 contains bias+BN shift
    h2 = acc * s2_ref[...] + b2_ref[...]
    x2 = leaky(h2) + res2 + r2b_ref[...]

    # ---- layer 3: GCN (BN3 folded) -> LeakyReLU -> + Linear residual ------
    # h4 > h16: keep A @ (X @ W) association.
    h16 = b3_ref.shape[1]
    zc3 = jnp.dot(x2, w3c_ref[...], preferred_element_type=jnp.float32)  # [N, 2*h16]
    h3 = jnp.dot(a, zc3[:, :h16], preferred_element_type=jnp.float32) + b3_ref[...]
    x3 = leaky(h3) + zc3[:, h16:] + r3b_ref[...]

    # ---- layer 4: GCN + projection Linear (folded, lane-dense output) -----
    ax3 = jnp.dot(a, x3, preferred_element_type=jnp.float32)            # [N, h16]
    o_ref[...] = jnp.dot(ax3, w4p_ref[...],
                         preferred_element_type=jnp.float32) + b4p_ref[...]


# ------------------------------ parameter prep -------------------------------

def prepare_params(p):
    """Fold BN / projection / residual weights once, outside the forward path."""
    heads, head_dim = p["att_src"].shape
    out_c = p["w4"].shape[1]

    # eval-mode BatchNorm folded into the preceding GCN weights/biases
    s1 = p["bn1_g"] * jax.lax.rsqrt(p["bn1_v"] + BN_EPS)
    w1f = p["w1"] * s1
    b1f = (p["b1"] - p["bn1_m"]) * s1 + p["bn1_b"]
    s3 = p["bn3_g"] * jax.lax.rsqrt(p["bn3_v"] + BN_EPS)
    w3f = p["w3"] * s3
    b3f = (p["b3"] - p["bn3_m"]) * s3 + p["bn3_b"]
    # BN2 follows the GAT (softmax is nonlinear in z): keep as post-affine,
    # fold the 1/heads head-mean into the scale and b2 into the shift.
    s2 = p["bn2_g"] * jax.lax.rsqrt(p["bn2_v"] + BN_EPS)
    s2f = s2 / heads
    b2f = (p["b2"] - p["bn2_m"]) * s2 + p["bn2_b"]

    # attention reductions as one MXU operand: [H*D, 2H] block structure
    attm = jnp.zeros((heads * head_dim, 2 * heads), jnp.float32)
    for h in range(heads):
        attm = attm.at[h * head_dim:(h + 1) * head_dim, h].set(p["att_src"][h])
        attm = attm.at[h * head_dim:(h + 1) * head_dim, heads + h].set(p["att_dst"][h])

    # shared-LHS concat of main + residual RHS for layers 2 and 3
    w2cat = jnp.concatenate([p["w2"], p["res2_w"]], axis=1)   # [hid, HD + h4]
    w3cat = jnp.concatenate([w3f, p["res3_w"]], axis=1)       # [h4, 2*h16]

    # conv4 + projection Linear folded, padded to a lane-dense 128-wide slab
    wp = jnp.zeros((out_c, LANE), jnp.float32).at[:, :out_c].set(p["proj_w"])
    bp = jnp.zeros((1, LANE), jnp.float32).at[:, :out_c].set(p["proj_b"])
    w4p = p["w4"] @ wp                                        # [h16, LANE]
    b4p = p["b4"] @ wp + bp                                   # [1, LANE]

    return {
        "w1f": w1f, "b1f": b1f, "r1w": p["res1_w"], "r1b": p["res1_b"],
        "w2cat": w2cat, "attm": attm, "s2f": s2f, "b2f": b2f, "r2b": p["res2_b"],
        "w3cat": w3cat, "b3f": b3f, "r3b": p["res3_b"],
        "w4p": w4p, "b4p": b4p,
        "out_c": out_c,
    }


# ------------------------------ pallas_call glue ----------------------------

def _full_spec(shape):
    nd = len(shape)
    return pl.BlockSpec(shape, lambda i, _nd=nd: (0,) * _nd)


@functools.partial(jax.jit, static_argnames=("out_c",))
def _forward_jit(pp, x, a_norm, neg_mask, *, out_c):
    n, in_c = x.shape
    attm = pp["attm"]
    heads = attm.shape[1] // 2
    head_dim = attm.shape[0] // heads
    hd = heads * head_dim
    hid = pp["w1f"].shape[1]
    h4 = pp["s2f"].shape[1]
    h16 = pp["b3f"].shape[1]

    args = (a_norm, neg_mask, x,
            pp["w1f"], pp["b1f"], pp["r1w"], pp["r1b"],
            pp["w2cat"], attm, pp["s2f"], pp["b2f"], pp["r2b"],
            pp["w3cat"], pp["b3f"], pp["r3b"],
            pp["w4p"], pp["b4p"])

    flops = 2 * n * (n * in_c                    # a @ x
                     + in_c * hid                # ax @ w1f
                     + in_c * hid                # x @ res1_w
                     + hid * (hd + h4)           # x1 @ [w2 | res2_w]
                     + hd * 2 * heads            # z_all @ attm
                     + heads * n * head_dim      # per-head p @ z
                     + h4 * 2 * h16              # x2 @ [w3f | res3_w]
                     + n * h16                   # a @ (x2 w3)
                     + n * h16                   # a @ x3
                     + h16 * LANE                # ax3 @ w4p
                     ) + 10 * heads * n * n      # softmax / mask VPU work
    bytes_accessed = 4 * (2 * n * n + n * in_c + n * LANE
                          + sum(int(a.size) for a in args[3:]))

    kern = functools.partial(_fused_gcn_kernel, heads=heads, head_dim=head_dim)
    out_pad = pl.pallas_call(
        kern,
        out_shape=jax.ShapeDtypeStruct((n, LANE), jnp.float32),
        grid=(1,),
        in_specs=[_full_spec(a.shape) for a in args],
        out_specs=_full_spec((n, LANE)),
        compiler_params=pltpu.CompilerParams(
            dimension_semantics=("arbitrary",)),
        cost_estimate=pl.CostEstimate(
            flops=int(flops),
            transcendentals=int(heads * (n * n + n)),
            bytes_accessed=int(bytes_accessed)),
    )(*args)
    return out_pad[:, :out_c]


def gcn_model_forward(prepped, x, a_norm, neg_mask):
    return _forward_jit(prepped, x, a_norm, neg_mask, out_c=int(prepped["out_c"]))


# ------------------------------ parameters ---------------------------------

def init_params(key, in_channels, hidden, out_channels):
    h4, h16, heads = hidden // 4, hidden // 16, 4

    def w(k, shape, scale=0.1):
        return (scale * jax.random.normal(k, shape)).astype(jnp.float32)

    ks = jax.random.split(key, 16)
    p = {
        # GCNConv1
        "w1": w(ks[0], (in_channels, hidden)), "b1": jnp.zeros((1, hidden), jnp.float32),
        # BatchNorm1 (PyG defaults: weight=1, bias=0, running mean/var = 0/1)
        "bn1_g": jnp.ones((1, hidden), jnp.float32), "bn1_b": jnp.zeros((1, hidden), jnp.float32),
        "bn1_m": jnp.zeros((1, hidden), jnp.float32), "bn1_v": jnp.ones((1, hidden), jnp.float32),
        # GATConv (heads=4, concat=False)
        "w2": w(ks[1], (hidden, heads * h4)),
        "att_src": w(ks[2], (heads, h4)), "att_dst": w(ks[3], (heads, h4)),
        "b2": jnp.zeros((1, h4), jnp.float32),
        "bn2_g": jnp.ones((1, h4), jnp.float32), "bn2_b": jnp.zeros((1, h4), jnp.float32),
        "bn2_m": jnp.zeros((1, h4), jnp.float32), "bn2_v": jnp.ones((1, h4), jnp.float32),
        # GCNConv3
        "w3": w(ks[4], (h4, h16)), "b3": jnp.zeros((1, h16), jnp.float32),
        "bn3_g": jnp.ones((1, h16), jnp.float32), "bn3_b": jnp.zeros((1, h16), jnp.float32),
        "bn3_m": jnp.zeros((1, h16), jnp.float32), "bn3_v": jnp.ones((1, h16), jnp.float32),
        # GCNConv4 + projection Linear
        "w4": w(ks[5], (h16, out_channels)), "b4": jnp.zeros((1, out_channels), jnp.float32),
        "proj_w": w(ks[6], (out_channels, out_channels)),
        "proj_b": w(ks[7], (1, out_channels)),
        # residual Linears
        "res1_w": w(ks[8], (in_channels, hidden)), "res1_b": w(ks[9], (1, hidden)),
        "res2_w": w(ks[10], (hidden, h4)),         "res2_b": w(ks[11], (1, h4)),
        "res3_w": w(ks[12], (h4, h16)),            "res3_b": w(ks[13], (1, h16)),
    }
    return p


def build_graph_mats(edge_index, n):
    src, dst = edge_index[0], edge_index[1]
    a = jnp.zeros((n, n), jnp.float32).at[dst, src].set(1.0)   # A[i,j]: edge j->i
    a_hat = jnp.maximum(a, jnp.eye(n, dtype=jnp.float32))      # add self loops
    deg = a_hat.sum(axis=1)
    dinv = jnp.where(deg > 0, 1.0 / jnp.sqrt(deg), 0.0)
    a_norm = dinv[:, None] * a_hat * dinv[None, :]             # D^-1/2 Â D^-1/2
    return a_norm, a_hat


# ------------------------------ pure-JAX reference --------------------------

def _ref_forward(p, x, a_norm, adj):
    def gcn(xin, w, b): return a_norm @ (xin @ w) + b

    def bn_act_res(h, g, bt, m, v, xin, wr, br):
        y = (h - m) / jnp.sqrt(v + BN_EPS) * g + bt
        y = jnp.where(y > 0, y, LEAKY_SLOPE * y)
        return y + xin @ wr + br

    def gat(xin, w, asrc, adst, b):
        z = xin @ w
        H, D = asrc.shape
        acc = 0.0
        for h in range(H):
            zh = z[:, h * D:(h + 1) * D]
            a_s = (zh * asrc[h]).sum(1)
            a_d = (zh * adst[h]).sum(1)
            e = a_d[:, None] + a_s[None, :]
            e = jnp.where(e > 0, e, GAT_SLOPE * e)
            e = jnp.where(adj > 0, e, -jnp.inf)
            acc = acc + jax.nn.softmax(e, axis=1) @ zh
        return acc / H + b

    x1 = bn_act_res(gcn(x, p["w1"], p["b1"]), p["bn1_g"], p["bn1_b"],
                    p["bn1_m"], p["bn1_v"], x, p["res1_w"], p["res1_b"])
    x2 = bn_act_res(gat(x1, p["w2"], p["att_src"], p["att_dst"], p["b2"]),
                    p["bn2_g"], p["bn2_b"], p["bn2_m"], p["bn2_v"],
                    x1, p["res2_w"], p["res2_b"])
    x3 = bn_act_res(gcn(x2, p["w3"], p["b3"]), p["bn3_g"], p["bn3_b"],
                    p["bn3_m"], p["bn3_v"], x2, p["res3_w"], p["res3_b"])
    return gcn(x3, p["w4"], p["b4"]) @ p["proj_w"] + p["proj_b"]


# ----------------------------------- main -----------------------------------

if __name__ == "__main__":
    N, IN_C, HID, OUT_C = 16, 16, 64, 8

    key = jax.random.PRNGKey(0)
    k_x, k_p = jax.random.split(key)

    x = jax.random.normal(k_x, (N, IN_C), dtype=jnp.float32)
    # deterministic synthetic graph: each node i has edges i->(i+1)%N, i->(i+3)%N
    src = jnp.concatenate([jnp.arange(N), jnp.arange(N)])
    dst = jnp.concatenate([(jnp.arange(N) + 1) % N, (jnp.arange(N) + 3) % N])
    edge_index = jnp.stack([src, dst]).astype(jnp.int32)   # [2, 32]

    a_norm, adj_mask = build_graph_mats(edge_index, N)
    # additive softmax mask precomputed once (every row has a self loop, so
    # each softmax row always contains at least one unmasked entry).
    neg_mask = jnp.where(adj_mask > 0, 0.0, NEG).astype(jnp.float32)

    params = init_params(k_p, IN_C, HID, OUT_C)
    prepped = jax.tree_util.tree_map(
        lambda a: a, prepare_params(params))  # one-time fold, outside forward

    out = gcn_model_forward(prepped, x, a_norm, neg_mask)
    out = jax.block_until_ready(out)

    ref = _ref_forward(params, x, a_norm, adj_mask)
    assert out.shape == (N, OUT_C)
    assert bool(jnp.all(jnp.isfinite(out)))
    assert bool(jnp.allclose(out, ref, rtol=1e-2, atol=1e-2))

    print("KERNEL_OK")
</pallas_src>

<mosaic_0001>
module attributes {stable_mosaic.version = 11 : i64} {
  func.func @_fused_gcn_kernel(%arg0: i32, %arg1: memref<16x16xf32, #tpu.memory_space<vmem>>, %arg2: memref<16x16xf32, #tpu.memory_space<vmem>>, %arg3: memref<16x16xf32, #tpu.memory_space<vmem>>, %arg4: memref<16x64xf32, #tpu.memory_space<vmem>>, %arg5: memref<1x64xf32, #tpu.memory_space<vmem>>, %arg6: memref<16x64xf32, #tpu.memory_space<vmem>>, %arg7: memref<1x64xf32, #tpu.memory_space<vmem>>, %arg8: memref<64x80xf32, #tpu.memory_space<vmem>>, %arg9: memref<64x8xf32, #tpu.memory_space<vmem>>, %arg10: memref<1x16xf32, #tpu.memory_space<vmem>>, %arg11: memref<1x16xf32, #tpu.memory_space<vmem>>, %arg12: memref<1x16xf32, #tpu.memory_space<vmem>>, %arg13: memref<16x8xf32, #tpu.memory_space<vmem>>, %arg14: memref<1x4xf32, #tpu.memory_space<vmem>>, %arg15: memref<1x4xf32, #tpu.memory_space<vmem>>, %arg16: memref<4x128xf32, #tpu.memory_space<vmem>>, %arg17: memref<1x128xf32, #tpu.memory_space<vmem>>, %arg18: memref<16x128xf32, #tpu.memory_space<vmem>>) attributes {dimension_semantics = [#tpu.dimension_semantics<arbitrary>], iteration_bounds = array<i64: 1>, scalar_prefetch = 0 : i64, scratch_operands = 0 : i64, tpu.core_type = #tpu.core_type<tc>, window_params = [{pipeline_mode = #tpu.pipeline_mode<synchronous>, transform_indices = @transform_0, window_bounds = array<i64: 16, 16>}, {pipeline_mode = #tpu.pipeline_mode<synchronous>, transform_indices = @transform_1, window_bounds = array<i64: 16, 16>}, {pipeline_mode = #tpu.pipeline_mode<synchronous>, transform_indices = @transform_2, window_bounds = array<i64: 16, 16>}, {pipeline_mode = #tpu.pipeline_mode<synchronous>, transform_indices = @transform_3, window_bounds = array<i64: 16, 64>}, {pipeline_mode = #tpu.pipeline_mode<synchronous>, transform_indices = @transform_4, window_bounds = array<i64: 1, 64>}, {pipeline_mode = #tpu.pipeline_mode<synchronous>, transform_indices = @transform_5, window_bounds = array<i64: 16, 64>}, {pipeline_mode = #tpu.pipeline_mode<synchronous>, transform_indices = @transform_6, window_bounds = array<i64: 1, 64>}, {pipeline_mode = #tpu.pipeline_mode<synchronous>, transform_indices = @transform_7, window_bounds = array<i64: 64, 80>}, {pipeline_mode = #tpu.pipeline_mode<synchronous>, transform_indices = @transform_8, window_bounds = array<i64: 64, 8>}, {pipeline_mode = #tpu.pipeline_mode<synchronous>, transform_indices = @transform_9, window_bounds = array<i64: 1, 16>}, {pipeline_mode = #tpu.pipeline_mode<synchronous>, transform_indices = @transform_10, window_bounds = array<i64: 1, 16>}, {pipeline_mode = #tpu.pipeline_mode<synchronous>, transform_indices = @transform_11, window_bounds = array<i64: 1, 16>}, {pipeline_mode = #tpu.pipeline_mode<synchronous>, transform_indices = @transform_12, window_bounds = array<i64: 16, 8>}, {pipeline_mode = #tpu.pipeline_mode<synchronous>, transform_indices = @transform_13, window_bounds = array<i64: 1, 4>}, {pipeline_mode = #tpu.pipeline_mode<synchronous>, transform_indices = @transform_14, window_bounds = array<i64: 1, 4>}, {pipeline_mode = #tpu.pipeline_mode<synchronous>, transform_indices = @transform_15, window_bounds = array<i64: 4, 128>}, {pipeline_mode = #tpu.pipeline_mode<synchronous>, transform_indices = @transform_16, window_bounds = array<i64: 1, 128>}, {pipeline_mode = #tpu.pipeline_mode<synchronous>, transform_indices = @transform_17, window_bounds = array<i64: 16, 128>}]} {
    %c0 = arith.constant 0 : index
    %c0_0 = arith.constant 0 : index
    %0 = vector.load %arg1[%c0, %c0_0] : memref<16x16xf32, #tpu.memory_space<vmem>>, vector<16x16xf32>
    %c0_1 = arith.constant 0 : index
    %c0_2 = arith.constant 0 : index
    %1 = vector.load %arg2[%c0_1, %c0_2] : memref<16x16xf32, #tpu.memory_space<vmem>>, vector<16x16xf32>
    %c0_3 = arith.constant 0 : index
    %c0_4 = arith.constant 0 : index
    %2 = vector.load %arg3[%c0_3, %c0_4] : memref<16x16xf32, #tpu.memory_space<vmem>>, vector<16x16xf32>
    %cst = arith.constant dense<0.000000e+00> : vector<16x16xf32>
    %3 = tpu.matmul %0, %2, %cst {dimension_numbers = #tpu.dot_dimension_numbers<[1], [0], [0], [1], [0, 0, 1, 1], [], []>} : vector<16x16xf32>, vector<16x16xf32>, vector<16x16xf32> -> vector<16x16xf32>
    %c0_5 = arith.constant 0 : index
    %c0_6 = arith.constant 0 : index
    %4 = vector.load %arg4[%c0_5, %c0_6] : memref<16x64xf32, #tpu.memory_space<vmem>>, vector<16x64xf32>
    %cst_7 = arith.constant dense<0.000000e+00> : vector<16x64xf32>
    %5 = tpu.matmul %3, %4, %cst_7 {dimension_numbers = #tpu.dot_dimension_numbers<[1], [0], [0], [1], [0, 0, 1, 1], [], []>} : vector<16x16xf32>, vector<16x64xf32>, vector<16x64xf32> -> vector<16x64xf32>
    %c0_8 = arith.constant 0 : index
    %c0_9 = arith.constant 0 : index
    %6 = vector.load %arg5[%c0_8, %c0_9] : memref<1x64xf32, #tpu.memory_space<vmem>>, vector<1x64xf32>
    %7 = vector.broadcast %6 : vector<1x64xf32> to vector<16x64xf32>
    %8 = arith.addf %5, %7 : vector<16x64xf32>
    %cst_10 = arith.constant 0.000000e+00 : f32
    %9 = vector.broadcast %cst_10 : f32 to vector<16x64xf32>
    %10 = arith.cmpf ogt, %8, %9 : vector<16x64xf32>
    %cst_11 = arith.constant 0.00999999977 : f32
    %11 = vector.broadcast %cst_11 : f32 to vector<16x64xf32>
    %12 = arith.mulf %11, %8 : vector<16x64xf32>
    %13 = arith.select %10, %8, %12 : vector<16x64xi1>, vector<16x64xf32>
    %c0_12 = arith.constant 0 : index
    %c0_13 = arith.constant 0 : index
    %14 = vector.load %arg6[%c0_12, %c0_13] : memref<16x64xf32, #tpu.memory_space<vmem>>, vector<16x64xf32>
    %cst_14 = arith.constant dense<0.000000e+00> : vector<16x64xf32>
    %15 = tpu.matmul %2, %14, %cst_14 {dimension_numbers = #tpu.dot_dimension_numbers<[1], [0], [0], [1], [0, 0, 1, 1], [], []>} : vector<16x16xf32>, vector<16x64xf32>, vector<16x64xf32> -> vector<16x64xf32>
    %16 = arith.addf %13, %15 : vector<16x64xf32>
    %c0_15 = arith.constant 0 : index
    %c0_16 = arith.constant 0 : index
    %17 = vector.load %arg7[%c0_15, %c0_16] : memref<1x64xf32, #tpu.memory_space<vmem>>, vector<1x64xf32>
    %18 = vector.broadcast %17 : vector<1x64xf32> to vector<16x64xf32>
    %19 = arith.addf %16, %18 : vector<16x64xf32>
    %c0_17 = arith.constant 0 : index
    %c0_18 = arith.constant 0 : index
    %20 = vector.load %arg8[%c0_17, %c0_18] : memref<64x80xf32, #tpu.memory_space<vmem>>, vector<64x80xf32>
    %cst_19 = arith.constant dense<0.000000e+00> : vector<16x80xf32>
    %21 = tpu.matmul %19, %20, %cst_19 {dimension_numbers = #tpu.dot_dimension_numbers<[1], [0], [0], [1], [0, 0, 1, 1], [], []>} : vector<16x64xf32>, vector<64x80xf32>, vector<16x80xf32> -> vector<16x80xf32>
    %22 = vector.extract_strided_slice %21 {offsets = [0, 0], sizes = [16, 64], strides = [1, 1]} : vector<16x80xf32> to vector<16x64xf32>
    %23 = vector.extract_strided_slice %21 {offsets = [0, 64], sizes = [16, 16], strides = [1, 1]} : vector<16x80xf32> to vector<16x16xf32>
    %c0_20 = arith.constant 0 : index
    %c0_21 = arith.constant 0 : index
    %24 = vector.load %arg9[%c0_20, %c0_21] : memref<64x8xf32, #tpu.memory_space<vmem>>, vector<64x8xf32>
    %cst_22 = arith.constant dense<0.000000e+00> : vector<16x8xf32>
    %25 = tpu.matmul %22, %24, %cst_22 {dimension_numbers = #tpu.dot_dimension_numbers<[1], [0], [0], [1], [0, 0, 1, 1], [], []>} : vector<16x64xf32>, vector<64x8xf32>, vector<16x8xf32> -> vector<16x8xf32>
    %26 = vector.extract_strided_slice %25 {offsets = [0, 0], sizes = [16, 4], strides = [1, 1]} : vector<16x8xf32> to vector<16x4xf32>
    %27 = tpu.transpose %26, [1, 0] : vector<16x4xf32> -> vector<4x16xf32>
    %28 = vector.extract_strided_slice %22 {offsets = [0, 0], sizes = [16, 16], strides = [1, 1]} : vector<16x64xf32> to vector<16x16xf32>
    %29 = vector.extract_strided_slice %27 {offsets = [0, 0], sizes = [1, 16], strides = [1, 1]} : vector<4x16xf32> to vector<1x16xf32>
    %30 = vector.extract_strided_slice %25 {offsets = [0, 4], sizes = [16, 1], strides = [1, 1]} : vector<16x8xf32> to vector<16x1xf32>
    %31 = vector.broadcast %30 : vector<16x1xf32> to vector<16x16xf32>
    %32 = vector.broadcast %29 : vector<1x16xf32> to vector<16x16xf32>
    %33 = arith.addf %31, %32 : vector<16x16xf32>
    %cst_23 = arith.constant 0.000000e+00 : f32
    %34 = vector.broadcast %cst_23 : f32 to vector<16x16xf32>
    %35 = arith.cmpf ogt, %33, %34 : vector<16x16xf32>
    %cst_24 = arith.constant 2.000000e-01 : f32
    %36 = vector.broadcast %cst_24 : f32 to vector<16x16xf32>
    %37 = arith.mulf %36, %33 : vector<16x16xf32>
    %38 = arith.select %35, %33, %37 : vector<16x16xi1>, vector<16x16xf32>
    %39 = arith.addf %38, %1 : vector<16x16xf32>
    %cst_25 = arith.constant dense<0xFF800000> : vector<16xf32>
    %40 = vector.multi_reduction <maximumf>, %39, %cst_25 [1] : vector<16x16xf32> to vector<16xf32>
    %41 = vector.shape_cast %40 : vector<16xf32> to vector<16x1xf32>
    %42 = vector.broadcast %41 : vector<16x1xf32> to vector<16x16xf32>
    %43 = arith.subf %39, %42 : vector<16x16xf32>
    %44 = math.exp %43 : vector<16x16xf32>
    %cst_26 = arith.constant dense<0.000000e+00> : vector<16xf32>
    %45 = vector.multi_reduction <add>, %44, %cst_26 [1] : vector<16x16xf32> to vector<16xf32>
    %46 = vector.shape_cast %45 : vector<16xf32> to vector<16x1xf32>
    %47 = tpu.reciprocal %46 {approx = true} : vector<16x1xf32> -> vector<16x1xf32>
    %48 = vector.broadcast %47 : vector<16x1xf32> to vector<16x16xf32>
    %49 = arith.mulf %44, %48 : vector<16x16xf32>
    %cst_27 = arith.constant dense<0.000000e+00> : vector<16x16xf32>
    %50 = tpu.matmul %49, %28, %cst_27 {dimension_numbers = #tpu.dot_dimension_numbers<[1], [0], [0], [1], [0, 0, 1, 1], [], []>} : vector<16x16xf32>, vector<16x16xf32>, vector<16x16xf32> -> vector<16x16xf32>
    %51 = vector.extract_strided_slice %22 {offsets = [0, 16], sizes = [16, 16], strides = [1, 1]} : vector<16x64xf32> to vector<16x16xf32>
    %52 = vector.extract_strided_slice %27 {offsets = [1, 0], sizes = [1, 16], strides = [1, 1]} : vector<4x16xf32> to vector<1x16xf32>
    %53 = vector.extract_strided_slice %25 {offsets = [0, 5], sizes = [16, 1], strides = [1, 1]} : vector<16x8xf32> to vector<16x1xf32>
    %54 = vector.broadcast %53 : vector<16x1xf32> to vector<16x16xf32>
    %55 = vector.broadcast %52 : vector<1x16xf32> to vector<16x16xf32>
    %56 = arith.addf %54, %55 : vector<16x16xf32>
    %cst_28 = arith.constant 0.000000e+00 : f32
    %57 = vector.broadcast %cst_28 : f32 to vector<16x16xf32>
    %58 = arith.cmpf ogt, %56, %57 : vector<16x16xf32>
    %cst_29 = arith.constant 2.000000e-01 : f32
    %59 = vector.broadcast %cst_29 : f32 to vector<16x16xf32>
    %60 = arith.mulf %59, %56 : vector<16x16xf32>
    %61 = arith.select %58, %56, %60 : vector<16x16xi1>, vector<16x16xf32>
    %62 = arith.addf %61, %1 : vector<16x16xf32>
    %cst_30 = arith.constant dense<0xFF800000> : vector<16xf32>
    %63 = vector.multi_reduction <maximumf>, %62, %cst_30 [1] : vector<16x16xf32> to vector<16xf32>
    %64 = vector.shape_cast %63 : vector<16xf32> to vector<16x1xf32>
    %65 = vector.broadcast %64 : vector<16x1xf32> to vector<16x16xf32>
    %66 = arith.subf %62, %65 : vector<16x16xf32>
    %67 = math.exp %66 : vector<16x16xf32>
    %cst_31 = arith.constant dense<0.000000e+00> : vector<16xf32>
    %68 = vector.multi_reduction <add>, %67, %cst_31 [1] : vector<16x16xf32> to vector<16xf32>
    %69 = vector.shape_cast %68 : vector<16xf32> to vector<16x1xf32>
    %70 = tpu.reciprocal %69 {approx = true} : vector<16x1xf32> -> vector<16x1xf32>
    %71 = vector.broadcast %70 : vector<16x1xf32> to vector<16x16xf32>
    %72 = arith.mulf %67, %71 : vector<16x16xf32>
    %cst_32 = arith.constant dense<0.000000e+00> : vector<16x16xf32>
    %73 = tpu.matmul %72, %51, %cst_32 {dimension_numbers = #tpu.dot_dimension_numbers<[1], [0], [0], [1], [0, 0, 1, 1], [], []>} : vector<16x16xf32>, vector<16x16xf32>, vector<16x16xf32> -> vector<16x16xf32>
    %74 = arith.addf %50, %73 : vector<16x16xf32>
    %75 = vector.extract_strided_slice %22 {offsets = [0, 32], sizes = [16, 16], strides = [1, 1]} : vector<16x64xf32> to vector<16x16xf32>
    %76 = vector.extract_strided_slice %27 {offsets = [2, 0], sizes = [1, 16], strides = [1, 1]} : vector<4x16xf32> to vector<1x16xf32>
    %77 = vector.extract_strided_slice %25 {offsets = [0, 6], sizes = [16, 1], strides = [1, 1]} : vector<16x8xf32> to vector<16x1xf32>
    %78 = vector.broadcast %77 : vector<16x1xf32> to vector<16x16xf32>
    %79 = vector.broadcast %76 : vector<1x16xf32> to vector<16x16xf32>
    %80 = arith.addf %78, %79 : vector<16x16xf32>
    %cst_33 = arith.constant 0.000000e+00 : f32
    %81 = vector.broadcast %cst_33 : f32 to vector<16x16xf32>
    %82 = arith.cmpf ogt, %80, %81 : vector<16x16xf32>
    %cst_34 = arith.constant 2.000000e-01 : f32
    %83 = vector.broadcast %cst_34 : f32 to vector<16x16xf32>
    %84 = arith.mulf %83, %80 : vector<16x16xf32>
    %85 = arith.select %82, %80, %84 : vector<16x16xi1>, vector<16x16xf32>
    %86 = arith.addf %85, %1 : vector<16x16xf32>
    %cst_35 = arith.constant dense<0xFF800000> : vector<16xf32>
    %87 = vector.multi_reduction <maximumf>, %86, %cst_35 [1] : vector<16x16xf32> to vector<16xf32>
    %88 = vector.shape_cast %87 : vector<16xf32> to vector<16x1xf32>
    %89 = vector.broadcast %88 : vector<16x1xf32> to vector<16x16xf32>
    %90 = arith.subf %86, %89 : vector<16x16xf32>
    %91 = math.exp %90 : vector<16x16xf32>
    %cst_36 = arith.constant dense<0.000000e+00> : vector<16xf32>
    %92 = vector.multi_reduction <add>, %91, %cst_36 [1] : vector<16x16xf32> to vector<16xf32>
    %93 = vector.shape_cast %92 : vector<16xf32> to vector<16x1xf32>
    %94 = tpu.reciprocal %93 {approx = true} : vector<16x1xf32> -> vector<16x1xf32>
    %95 = vector.broadcast %94 : vector<16x1xf32> to vector<16x16xf32>
    %96 = arith.mulf %91, %95 : vector<16x16xf32>
    %cst_37 = arith.constant dense<0.000000e+00> : vector<16x16xf32>
    %97 = tpu.matmul %96, %75, %cst_37 {dimension_numbers = #tpu.dot_dimension_numbers<[1], [0], [0], [1], [0, 0, 1, 1], [], []>} : vector<16x16xf32>, vector<16x16xf32>, vector<16x16xf32> -> vector<16x16xf32>
    %98 = arith.addf %74, %97 : vector<16x16xf32>
    %99 = vector.extract_strided_slice %22 {offsets = [0, 48], sizes = [16, 16], strides = [1, 1]} : vector<16x64xf32> to vector<16x16xf32>
    %100 = vector.extract_strided_slice %27 {offsets = [3, 0], sizes = [1, 16], strides = [1, 1]} : vector<4x16xf32> to vector<1x16xf32>
    %101 = vector.extract_strided_slice %25 {offsets = [0, 7], sizes = [16, 1], strides = [1, 1]} : vector<16x8xf32> to vector<16x1xf32>
    %102 = vector.broadcast %101 : vector<16x1xf32> to vector<16x16xf32>
    %103 = vector.broadcast %100 : vector<1x16xf32> to vector<16x16xf32>
    %104 = arith.addf %102, %103 : vector<16x16xf32>
    %cst_38 = arith.constant 0.000000e+00 : f32
    %105 = vector.broadcast %cst_38 : f32 to vector<16x16xf32>
    %106 = arith.cmpf ogt, %104, %105 : vector<16x16xf32>
    %cst_39 = arith.constant 2.000000e-01 : f32
    %107 = vector.broadcast %cst_39 : f32 to vector<16x16xf32>
    %108 = arith.mulf %107, %104 : vector<16x16xf32>
    %109 = arith.select %106, %104, %108 : vector<16x16xi1>, vector<16x16xf32>
    %110 = arith.addf %109, %1 : vector<16x16xf32>
    %cst_40 = arith.constant dense<0xFF800000> : vector<16xf32>
    %111 = vector.multi_reduction <maximumf>, %110, %cst_40 [1] : vector<16x16xf32> to vector<16xf32>
    %112 = vector.shape_cast %111 : vector<16xf32> to vector<16x1xf32>
    %113 = vector.broadcast %112 : vector<16x1xf32> to vector<16x16xf32>
    %114 = arith.subf %110, %113 : vector<16x16xf32>
    %115 = math.exp %114 : vector<16x16xf32>
    %cst_41 = arith.constant dense<0.000000e+00> : vector<16xf32>
    %116 = vector.multi_reduction <add>, %115, %cst_41 [1] : vector<16x16xf32> to vector<16xf32>
    %117 = vector.shape_cast %116 : vector<16xf32> to vector<16x1xf32>
    %118 = tpu.reciprocal %117 {approx = true} : vector<16x1xf32> -> vector<16x1xf32>
    %119 = vector.broadcast %118 : vector<16x1xf32> to vector<16x16xf32>
    %120 = arith.mulf %115, %119 : vector<16x16xf32>
    %cst_42 = arith.constant dense<0.000000e+00> : vector<16x16xf32>
    %121 = tpu.matmul %120, %99, %cst_42 {dimension_numbers = #tpu.dot_dimension_numbers<[1], [0], [0], [1], [0, 0, 1, 1], [], []>} : vector<16x16xf32>, vector<16x16xf32>, vector<16x16xf32> -> vector<16x16xf32>
    %122 = arith.addf %98, %121 : vector<16x16xf32>
    %c0_43 = arith.constant 0 : index
    %c0_44 = arith.constant 0 : index
    %123 = vector.load %arg10[%c0_43, %c0_44] : memref<1x16xf32, #tpu.memory_space<vmem>>, vector<1x16xf32>
    %124 = vector.broadcast %123 : vector<1x16xf32> to vector<16x16xf32>
    %125 = arith.mulf %122, %124 : vector<16x16xf32>
    %c0_45 = arith.constant 0 : index
    %c0_46 = arith.constant 0 : index
    %126 = vector.load %arg11[%c0_45, %c0_46] : memref<1x16xf32, #tpu.memory_space<vmem>>, vector<1x16xf32>
    %127 = vector.broadcast %126 : vector<1x16xf32> to vector<16x16xf32>
    %128 = arith.addf %125, %127 : vector<16x16xf32>
    %cst_47 = arith.constant 0.000000e+00 : f32
    %129 = vector.broadcast %cst_47 : f32 to vector<16x16xf32>
    %130 = arith.cmpf ogt, %128, %129 : vector<16x16xf32>
    %cst_48 = arith.constant 0.00999999977 : f32
    %131 = vector.broadcast %cst_48 : f32 to vector<16x16xf32>
    %132 = arith.mulf %131, %128 : vector<16x16xf32>
    %133 = arith.select %130, %128, %132 : vector<16x16xi1>, vector<16x16xf32>
    %134 = arith.addf %133, %23 : vector<16x16xf32>
    %c0_49 = arith.constant 0 : index
    %c0_50 = arith.constant 0 : index
    %135 = vector.load %arg12[%c0_49, %c0_50] : memref<1x16xf32, #tpu.memory_space<vmem>>, vector<1x16xf32>
    %136 = vector.broadcast %135 : vector<1x16xf32> to vector<16x16xf32>
    %137 = arith.addf %134, %136 : vector<16x16xf32>
    %c0_51 = arith.constant 0 : index
    %c0_52 = arith.constant 0 : index
    %138 = vector.load %arg13[%c0_51, %c0_52] : memref<16x8xf32, #tpu.memory_space<vmem>>, vector<16x8xf32>
    %cst_53 = arith.constant dense<0.000000e+00> : vector<16x8xf32>
    %139 = tpu.matmul %137, %138, %cst_53 {dimension_numbers = #tpu.dot_dimension_numbers<[1], [0], [0], [1], [0, 0, 1, 1], [], []>} : vector<16x16xf32>, vector<16x8xf32>, vector<16x8xf32> -> vector<16x8xf32>
    %140 = vector.extract_strided_slice %139 {offsets = [0, 0], sizes = [16, 4], strides = [1, 1]} : vector<16x8xf32> to vector<16x4xf32>
    %cst_54 = arith.constant dense<0.000000e+00> : vector<16x4xf32>
    %141 = tpu.matmul %0, %140, %cst_54 {dimension_numbers = #tpu.dot_dimension_numbers<[1], [0], [0], [1], [0, 0, 1, 1], [], []>} : vector<16x16xf32>, vector<16x4xf32>, vector<16x4xf32> -> vector<16x4xf32>
    %c0_55 = arith.constant 0 : index
    %c0_56 = arith.constant 0 : index
    %142 = vector.load %arg14[%c0_55, %c0_56] : memref<1x4xf32, #tpu.memory_space<vmem>>, vector<1x4xf32>
    %143 = vector.broadcast %142 : vector<1x4xf32> to vector<16x4xf32>
    %144 = arith.addf %141, %143 : vector<16x4xf32>
    %cst_57 = arith.constant 0.000000e+00 : f32
    %145 = vector.broadcast %cst_57 : f32 to vector<16x4xf32>
    %146 = arith.cmpf ogt, %144, %145 : vector<16x4xf32>
    %cst_58 = arith.constant 0.00999999977 : f32
    %147 = vector.broadcast %cst_58 : f32 to vector<16x4xf32>
    %148 = arith.mulf %147, %144 : vector<16x4xf32>
    %149 = arith.select %146, %144, %148 : vector<16x4xi1>, vector<16x4xf32>
    %150 = vector.extract_strided_slice %139 {offsets = [0, 4], sizes = [16, 4], strides = [1, 1]} : vector<16x8xf32> to vector<16x4xf32>
    %151 = arith.addf %149, %150 : vector<16x4xf32>
    %c0_59 = arith.constant 0 : index
    %c0_60 = arith.constant 0 : index
    %152 = vector.load %arg15[%c0_59, %c0_60] : memref<1x4xf32, #tpu.memory_space<vmem>>, vector<1x4xf32>
    %153 = vector.broadcast %152 : vector<1x4xf32> to vector<16x4xf32>
    %154 = arith.addf %151, %153 : vector<16x4xf32>
    %cst_61 = arith.constant dense<0.000000e+00> : vector<16x4xf32>
    %155 = tpu.matmul %0, %154, %cst_61 {dimension_numbers = #tpu.dot_dimension_numbers<[1], [0], [0], [1], [0, 0, 1, 1], [], []>} : vector<16x16xf32>, vector<16x4xf32>, vector<16x4xf32> -> vector<16x4xf32>
    %c0_62 = arith.constant 0 : index
    %c0_63 = arith.constant 0 : index
    %156 = vector.load %arg16[%c0_62, %c0_63] : memref<4x128xf32, #tpu.memory_space<vmem>>, vector<4x128xf32>
    %cst_64 = arith.constant dense<0.000000e+00> : vector<16x128xf32>
    %157 = tpu.matmul %155, %156, %cst_64 {dimension_numbers = #tpu.dot_dimension_numbers<[1], [0], [0], [1], [0, 0, 1, 1], [], []>} : vector<16x4xf32>, vector<4x128xf32>, vector<16x128xf32> -> vector<16x128xf32>
    %c0_65 = arith.constant 0 : index
    %c0_66 = arith.constant 0 : index
    %158 = vector.load %arg17[%c0_65, %c0_66] : memref<1x128xf32, #tpu.memory_space<vmem>>, vector<1x128xf32>
    %159 = vector.broadcast %158 : vector<1x128xf32> to vector<16x128xf32>
    %160 = arith.addf %157, %159 : vector<16x128xf32>
    %c0_67 = arith.constant 0 : index
    %c0_68 = arith.constant 0 : index
    %161 = vector.load %arg18[%c0_67, %c0_68] : memref<16x128xf32, #tpu.memory_space<vmem>>, vector<16x128xf32>
    tpu.vector_store %arg18[%c0_67, %c0_68], %160 {strides = array<i32>} : memref<16x128xf32, #tpu.memory_space<vmem>>, vector<16x128xf32>,
    return
  }
  func.func @transform_0(%arg0: i32) -> (i32, i32) {
    %c0_i32 = arith.constant 0 : i32
    %c0_i32_0 = arith.constant 0 : i32
    %c0_i32_1 = arith.constant 0 : i32
    return %c0_i32, %c0_i32_0 : i32, i32
  }
  func.func @transform_1(%arg0: i32) -> (i32, i32) {
    %c0_i32 = arith.constant 0 : i32
    %c0_i32_0 = arith.constant 0 : i32
    %c0_i32_1 = arith.constant 0 : i32
    return %c0_i32, %c0_i32_0 : i32, i32
  }
  func.func @transform_2(%arg0: i32) -> (i32, i32) {
    %c0_i32 = arith.constant 0 : i32
    %c0_i32_0 = arith.constant 0 : i32
    %c0_i32_1 = arith.constant 0 : i32
    return %c0_i32, %c0_i32_0 : i32, i32
  }
  func.func @transform_3(%arg0: i32) -> (i32, i32) {
    %c0_i32 = arith.constant 0 : i32
    %c0_i32_0 = arith.constant 0 : i32
    %c0_i32_1 = arith.constant 0 : i32
    return %c0_i32, %c0_i32_0 : i32, i32
  }
  func.func @transform_4(%arg0: i32) -> (i32, i32) {
    %c0_i32 = arith.constant 0 : i32
    %c0_i32_0 = arith.constant 0 : i32
    %c0_i32_1 = arith.constant 0 : i32
    return %c0_i32, %c0_i32_0 : i32, i32
  }
  func.func @transform_5(%arg0: i32) -> (i32, i32) {
    %c0_i32 = arith.constant 0 : i32
    %c0_i32_0 = arith.constant 0 : i32
    %c0_i32_1 = arith.constant 0 : i32
    return %c0_i32, %c0_i32_0 : i32, i32
  }
  func.func @transform_6(%arg0: i32) -> (i32, i32) {
    %c0_i32 = arith.constant 0 : i32
    %c0_i32_0 = arith.constant 0 : i32
    %c0_i32_1 = arith.constant 0 : i32
    return %c0_i32, %c0_i32_0 : i32, i32
  }
  func.func @transform_7(%arg0: i32) -> (i32, i32) {
    %c0_i32 = arith.constant 0 : i32
    %c0_i32_0 = arith.constant 0 : i32
    %c0_i32_1 = arith.constant 0 : i32
    return %c0_i32, %c0_i32_0 : i32, i32
  }
  func.func @transform_8(%arg0: i32) -> (i32, i32) {
    %c0_i32 = arith.constant 0 : i32
    %c0_i32_0 = arith.constant 0 : i32
    %c0_i32_1 = arith.constant 0 : i32
    return %c0_i32, %c0_i32_0 : i32, i32
  }
  func.func @transform_9(%arg0: i32) -> (i32, i32) {
    %c0_i32 = arith.constant 0 : i32
    %c0_i32_0 = arith.constant 0 : i32
    %c0_i32_1 = arith.constant 0 : i32
    return %c0_i32, %c0_i32_0 : i32, i32
  }
  func.func @transform_10(%arg0: i32) -> (i32, i32) {
    %c0_i32 = arith.constant 0 : i32
    %c0_i32_0 = arith.constant 0 : i32
    %c0_i32_1 = arith.constant 0 : i32
    return %c0_i32, %c0_i32_0 : i32, i32
  }
  func.func @transform_11(%arg0: i32) -> (i32, i32) {
    %c0_i32 = arith.constant 0 : i32
    %c0_i32_0 = arith.constant 0 : i32
    %c0_i32_1 = arith.constant 0 : i32
    return %c0_i32, %c0_i32_0 : i32, i32
  }
  func.func @transform_12(%arg0: i32) -> (i32, i32) {
    %c0_i32 = arith.constant 0 : i32
    %c0_i32_0 = arith.constant 0 : i32
    %c0_i32_1 = arith.constant 0 : i32
    return %c0_i32, %c0_i32_0 : i32, i32
  }
  func.func @transform_13(%arg0: i32) -> (i32, i32) {
    %c0_i32 = arith.constant 0 : i32
    %c0_i32_0 = arith.constant 0 : i32
    %c0_i32_1 = arith.constant 0 : i32
    return %c0_i32, %c0_i32_0 : i32, i32
  }
  func.func @transform_14(%arg0: i32) -> (i32, i32) {
    %c0_i32 = arith.constant 0 : i32
    %c0_i32_0 = arith.constant 0 : i32
    %c0_i32_1 = arith.constant 0 : i32
    return %c0_i32, %c0_i32_0 : i32, i32
  }
  func.func @transform_15(%arg0: i32) -> (i32, i32) {
    %c0_i32 = arith.constant 0 : i32
    %c0_i32_0 = arith.constant 0 : i32
    %c0_i32_1 = arith.constant 0 : i32
    return %c0_i32, %c0_i32_0 : i32, i32
  }
  func.func @transform_16(%arg0: i32) -> (i32, i32) {
    %c0_i32 = arith.constant 0 : i32
    %c0_i32_0 = arith.constant 0 : i32
    %c0_i32_1 = arith.constant 0 : i32
    return %c0_i32, %c0_i32_0 : i32, i32
  }
  func.func @transform_17(%arg0: i32) -> (i32, i32) {
    %c0_i32 = arith.constant 0 : i32
    %c0_i32_0 = arith.constant 0 : i32
    %c0_i32_1 = arith.constant 0 : i32
    return %c0_i32, %c0_i32_0 : i32, i32
  }
}

</mosaic_0001>

<bundles_post_ra>
// kernel: _forward_jit.1
= control target key start
LH: loop header
LB: loop body
LE: loop exit
PB: predicated region body
PF: predicated region fallthrough
CT: control target
= control target key end

     0   :  { %s2399_s0 = inlined_call_operand.vmem [shape: f32[16,16], index: 0, kind: input, shape index: {}]   ;;  %s2400_s1 = inlined_call_operand.vmem [shape: f32[16,16], index: 1, kind: input, shape index: {}]   ;;  %s2401_s2 = inlined_call_operand.vmem [shape: f32[16,16], index: 2, kind: input, shape index: {}]   ;;  %s2402_s3 = inlined_call_operand.hbm [shape: f32[16,64], index: 3, kind: input, shape index: {}]   ;;  %s2403_s4 = inlined_call_operand.hbm [shape: f32[1,64], index: 4, kind: input, shape index: {}]   ;;  %s2404_s5 = inlined_call_operand.hbm [shape: f32[16,64], index: 5, kind: input, shape index: {}]   ;;  %s2405_s6 = inlined_call_operand.hbm [shape: f32[1,64], index: 6, kind: input, shape index: {}]   ;;  %s2406_s7 = inlined_call_operand.vmem [shape: f32[64,80], index: 7, kind: input, shape index: {}]   ;;  %s2407_s8 = inlined_call_operand.vmem [shape: f32[64,8], index: 8, kind: input, shape index: {}]   ;;  %s2408_s9 = inlined_call_operand.hbm [shape: f32[1,16], index: 9, kind: input, shape index: {}]   ;;  %s2409_s10 = inlined_call_operand.hbm [shape: f32[1,16], index: 10, kind: input, shape index: {}]   ;;  %s2410_s11 = inlined_call_operand.hbm [shape: f32[1,16], index: 11, kind: input, shape index: {}]   ;;  %s2411_s12 = inlined_call_operand.vmem [shape: f32[16,8], index: 12, kind: input, shape index: {}]   ;;  %s2412_s13 = inlined_call_operand.hbm [shape: f32[1,4], index: 13, kind: input, shape index: {}]   ;;  %s2413_s14 = inlined_call_operand.hbm [shape: f32[1,4], index: 14, kind: input, shape index: {}]   ;;  %s2414_s15 = inlined_call_operand.vmem [shape: f32[4,128], index: 15, kind: input, shape index: {}]   ;;  %s2415_s16 = inlined_call_operand.hbm [shape: f32[1,128], index: 16, kind: input, shape index: {}]   ;;  %s2416_s17 = inlined_call_operand.vmem [shape: f32[16,128], index: 17, kind: output, shape index: {}]  }
   0x1   :  { %2419 = sst [smem:[#allocation24_spill]] %s2399_s0 }
   0x2   :  { %2420 = sst [smem:[#allocation25_spill]] %s2400_s1 }
   0x3   :  { %22 = vsyncpa [#allocation3], 0 }
   0x4   :  { %23 = vsyncpa [#allocation5], 0 }
   0x5   :  { %24 = vsyncpa [#allocation8], 0 }
   0x6   :  { %25 = vsyncpa [#allocation11], 0 }
   0x7   :  { %26 = vsyncpa [#allocation14], 0 }
   0x8   :  { %27 = vsyncpa [#allocation17], 0  ;;  %s2085_s24 = smov [#allocation4]   ;;  %s2086_s26 = smov [#allocation7]  }
   0x9   :  { %s52_s25 = sshll.u32 %s2085_s24, 4  ;;  %s74_s27 = sshll.u32 %s2086_s26, 4  ;;  %s53_s25 = int_to_ptr.vmem [resolvable:$true] %s52_s25  ;;  %s75_s27 = int_to_ptr.vmem [resolvable:$true] %s74_s27 }
   0xa   :  { %s1881_s28 = scalar_lea.vmem %s53_s25, 16  ;;  %s1885_s29 = scalar_lea.vmem %s53_s25, 32 }
   0xb   :  { %p1882_p0 = scmp.ne.s32.totalorder %s53_s25, %s1881_s28  ;;  %p1886_p1 = scmp.lt.s32.totalorder %s53_s25, %s53_s25 }
   0xc   :  { %p1887_p2 = scmp.lt.s32.totalorder %s1885_s29, %s1881_s28 }
   0xe   :  { %p1888_p3 = por %p1887_p2, %p1886_p1 }
  0x10   :  { %p1889_p4 = pnand %p1888_p3, %p1882_p0 }
  0x12   :  { %1892 = shalt.err (!%p1889_p4)
}
  0x13   :  { %55 = dma.hbm_to_vmem [thread:$0]  %s2403_s4, 16, %s53_s25, [#allocation5]  }
  0x14   :  { %s1901_s18 = scalar_lea.vmem %s75_s27, 16  ;;  %s1905_s19 = scalar_lea.vmem %s75_s27, 32 }
  0x15   :  { %p1902_p5 = scmp.ne.s32.totalorder %s75_s27, %s1901_s18  ;;  %p1906_p6 = scmp.lt.s32.totalorder %s75_s27, %s75_s27 }
  0x16   :  { %p1907_p7 = scmp.lt.s32.totalorder %s1905_s19, %s1901_s18 }
  0x18   :  { %p1908_p8 = por %p1907_p7, %p1906_p6 }
  0x1a   :  { %p1909_p9 = pnand %p1908_p8, %p1902_p5 }
  0x1c   :  { %1912 = shalt.err (!%p1909_p9)
}
  0x1d   :  { %77 = dma.hbm_to_vmem [thread:$0]  %s2405_s6, 16, %s75_s27, [#allocation8]  }
  0x1e   :  { %s2087_s21 = smov [#allocation10]   ;;  %s2088_s23 = smov [#allocation13]  }
  0x1f   :  { %s98_s22 = sshll.u32 %s2087_s21, 4  ;;  %s120_s24 = sshll.u32 %s2088_s23, 4  ;;  %s99_s22 = int_to_ptr.vmem [resolvable:$true] %s98_s22  ;;  %s121_s24 = int_to_ptr.vmem [resolvable:$true] %s120_s24 }
  0x20   :  { %s1921_s26 = scalar_lea.vmem %s99_s22, 16  ;;  %s1925_s4 = scalar_lea.vmem %s99_s22, 32 }
  0x21   :  { %p1922_p10 = scmp.ne.s32.totalorder %s99_s22, %s1921_s26  ;;  %p1926_p11 = scmp.lt.s32.totalorder %s99_s22, %s99_s22 }
  0x22   :  { %p1927_p12 = scmp.lt.s32.totalorder %s1925_s4, %s1921_s26 }
  0x24   :  { %p1928_p13 = por %p1927_p12, %p1926_p11 }
  0x26   :  { %p1929_p0 = pnand %p1928_p13, %p1922_p10 }
  0x28   :  { %1932 = shalt.err (!%p1929_p0)
}
  0x29   :  { %101 = dma.hbm_to_vmem [thread:$0]  %s2409_s10, 16, %s99_s22, [#allocation11]  }
  0x2a   :  { %s1941_s29 = scalar_lea.vmem %s121_s24, 16  ;;  %s1945_s6 = scalar_lea.vmem %s121_s24, 32 }
  0x2b   :  { %p1942_p1 = scmp.ne.s32.totalorder %s121_s24, %s1941_s29  ;;  %p1946_p2 = scmp.lt.s32.totalorder %s121_s24, %s121_s24 }
  0x2c   :  { %p1947_p3 = scmp.lt.s32.totalorder %s1945_s6, %s1941_s29 }
  0x2e   :  { %p1948_p4 = por %p1947_p3, %p1946_p2 }
  0x30   :  { %p1949_p5 = pnand %p1948_p4, %p1942_p1 }
  0x32   :  { %1952 = shalt.err (!%p1949_p5)
}
  0x33   :  { %123 = dma.hbm_to_vmem [thread:$0]  %s2412_s13, 16, %s121_s24, [#allocation14]  }
  0x34   :  { %s2089_s30 = smov [#allocation2]  }
  0x35   :  { %s39_s18 = sshll.u32 %s2089_s30, 4  ;;  %s40_s18 = int_to_ptr.vmem [resolvable:$true] %s39_s18 }
  0x36   :  { %s1961_s19 = scalar_lea.vmem %s40_s18, 256  ;;  %p1966_p7 = scmp.lt.s32.totalorder %s40_s18, %s40_s18 }
  0x37   :  { %p1962_p6 = scmp.ne.s32.totalorder %s40_s18, %s1961_s19  ;;  %p1967_p8 = scmp.lt.s32.totalorder %s1961_s19, %s1961_s19 }
  0x39   :  { %p1968_p9 = por %p1967_p8, %p1966_p7 }
  0x3b   :  { %p1969_p10 = pnand %p1968_p9, %p1962_p6 }
  0x3d   :  { %1972 = shalt.err (!%p1969_p10)
}
  0x3e   :  { %s2090_s10 = smov 128   ;;  %s2091_s1 = smov 8  }
  0x3f   :  { %45 = dma.hbm_to_vmem [thread:$0]  %s2402_s3, 256, %s40_s18, [#allocation3], %s2090_s10, %s2090_s10, %s2091_s1  }
  0x40   :  { %s2092_s22 = smov [#allocation6]   ;;  %s2093_s13 = smov [#allocation9]  }
  0x41   :  { %s61_s23 = sshll.u32 %s2092_s22, 4  ;;  %s88_s24 = sshll.u32 %s2093_s13, 4  ;;  %s62_s23 = int_to_ptr.vmem [resolvable:$true] %s61_s23  ;;  %s89_s24 = int_to_ptr.vmem [resolvable:$true] %s88_s24 }
  0x42   :  { %s1981_s26 = scalar_lea.vmem %s62_s23, 256  ;;  %p1986_p12 = scmp.lt.s32.totalorder %s62_s23, %s62_s23 }
  0x43   :  { %p1982_p11 = scmp.ne.s32.totalorder %s62_s23, %s1981_s26  ;;  %p1987_p13 = scmp.lt.s32.totalorder %s1981_s26, %s1981_s26 }
  0x45   :  { %p1988_p0 = por %p1987_p13, %p1986_p12 }
  0x47   :  { %p1989_p1 = pnand %p1988_p0, %p1982_p11 }
  0x49   :  { %1992 = shalt.err (!%p1989_p1)
}
  0x4a   :  { %67 = dma.hbm_to_vmem [thread:$0]  %s2404_s5, 256, %s62_s23, [#allocation5], %s2090_s10, %s2090_s10, %s2091_s1  }
  0x4b   :  { %s2001_s28 = scalar_lea.vmem %s89_s24, 16  ;;  %s2005_s3 = scalar_lea.vmem %s89_s24, 32 }
  0x4c   :  { %p2002_p2 = scmp.ne.s32.totalorder %s89_s24, %s2001_s28  ;;  %p2006_p3 = scmp.lt.s32.totalorder %s89_s24, %s89_s24 }
  0x4d   :  { %p2007_p4 = scmp.lt.s32.totalorder %s2005_s3, %s2001_s28 }
  0x4f   :  { %p2008_p5 = por %p2007_p4, %p2006_p3 }
  0x51   :  { %p2009_p6 = pnand %p2008_p5, %p2002_p2 }
  0x53   :  { %2012 = shalt.err (!%p2009_p6)
}
  0x54   :  { %91 = dma.hbm_to_vmem [thread:$0]  %s2408_s9, 16, %s89_s24, [#allocation8]  }
  0x55   :  { %s2094_s27 = smov [#allocation12]   ;;  %s2095_s30 = smov [#allocation15]  }
  0x56   :  { %s108_s0 = sshll.u32 %s2094_s27, 4  ;;  %s130_s18 = sshll.u32 %s2095_s30, 4  ;;  %s109_s0 = int_to_ptr.vmem [resolvable:$true] %s108_s0  ;;  %s131_s18 = int_to_ptr.vmem [resolvable:$true] %s130_s18 }
  0x57   :  { %s2021_s19 = scalar_lea.vmem %s109_s0, 16  ;;  %s2025_s5 = scalar_lea.vmem %s109_s0, 32 }
  0x58   :  { %p2022_p7 = scmp.ne.s32.totalorder %s109_s0, %s2021_s19  ;;  %p2026_p8 = scmp.lt.s32.totalorder %s109_s0, %s109_s0 }
  0x59   :  { %p2027_p9 = scmp.lt.s32.totalorder %s2025_s5, %s2021_s19 }
  0x5b   :  { %p2028_p10 = por %p2027_p9, %p2026_p8 }
  0x5d   :  { %p2029_p11 = pnand %p2028_p10, %p2022_p7 }
  0x5f   :  { %2032 = shalt.err (!%p2029_p11)
}
  0x60   :  { %111 = dma.hbm_to_vmem [thread:$0]  %s2410_s11, 16, %s109_s0, [#allocation11]  }
  0x61   :  { %s2041_s20 = scalar_lea.vmem %s131_s18, 16  ;;  %s2045_s9 = scalar_lea.vmem %s131_s18, 32 }
  0x62   :  { %p2042_p12 = scmp.ne.s32.totalorder %s131_s18, %s2041_s20  ;;  %p2046_p13 = scmp.lt.s32.totalorder %s131_s18, %s131_s18 }
  0x63   :  { %p2047_p0 = scmp.lt.s32.totalorder %s2045_s9, %s2041_s20 }
  0x65   :  { %p2048_p1 = por %p2047_p0, %p2046_p13 }
  0x67   :  { %p2049_p2 = pnand %p2048_p1, %p2042_p12 }
  0x69   :  { %2052 = shalt.err (!%p2049_p2)
}
  0x6a   :  { %133 = dma.hbm_to_vmem [thread:$0]  %s2413_s14, 16, %s131_s18, [#allocation14]  }
  0x6b   :  { %s2096_s23 = smov [#allocation16]  }
  0x6c   :  { %s142_s13 = sshll.u32 %s2096_s23, 4  ;;  %s143_s13 = int_to_ptr.vmem [resolvable:$true] %s142_s13 }
  0x6d   :  { %s2061_s24 = scalar_lea.vmem %s143_s13, 16  ;;  %s2065_s26 = scalar_lea.vmem %s143_s13, 32 }
  0x6e   :  { %p2062_p3 = scmp.ne.s32.totalorder %s143_s13, %s2061_s24  ;;  %p2066_p4 = scmp.lt.s32.totalorder %s143_s13, %s143_s13 }
  0x6f   :  { %p2067_p5 = scmp.lt.s32.totalorder %s2065_s26, %s2061_s24 }
  0x71   :  { %p2068_p6 = por %p2067_p5, %p2066_p4 }
  0x73   :  { %p2069_p7 = pnand %p2068_p6, %p2062_p3 }
  0x75   :  { %2072 = shalt.err (!%p2069_p7)
}
  0x76   :  { %145 = dma.hbm_to_vmem [thread:$0]  %s2415_s16, 16, %s143_s13, [#allocation17]  }
  0x77   :  { %2073 = dma.done.wait [#allocation3], 256  }
  0x78   :  { %2074 = vsyncadd [#allocation3], 4294967040 }
  0x79   :  { %2075 = dma.done.wait [#allocation5], 272  }
  0x7a   :  { %2076 = vsyncadd [#allocation5], 4294967024 }
  0x7b   :  { %2077 = dma.done.wait [#allocation8], 32  }
  0x7c   :  { %2078 = vsyncadd [#allocation8], 4294967264 }
  0x7d   :  { %2079 = dma.done.wait [#allocation11], 32  }
  0x7e   :  { %2080 = vsyncadd [#allocation11], 4294967264 }
  0x7f   :  { %2081 = dma.done.wait [#allocation14], 32  }
  0x80   :  { %2082 = vsyncadd [#allocation14], 4294967264 }
  0x81   :  { %2083 = dma.done.wait [#allocation17], 16  }
  0x82   :  { %2084 = vsyncadd [#allocation17], 4294967280  ;;  %vm182_vm0 = vcmask 130048   ;;  %v181_v0 = vld [vmem:[%s2401_s2 + $0x8] sm:$0xff]  ;;  %v180_v1 = vld [vmem:[%s2401_s2] sm:$0xff]  ;;  %s2421_s6 = sld [smem:[#allocation24_spill]]  ;;  %v675_v52 = vlaneseq }
  0x83   :  { %1699 = vmatprep.subr.mxu0 %v181_v0  ;;  %v265_v4 = vld [vmem:[#allocation2 + $0x8] sm:$0xff]  ;;  %v264_v5 = vld [vmem:[#allocation2] sm:$0xff]  ;;  %v360_v7 = vld [vmem:[#allocation6] sm:$0xff]  ;;  %vm462_vm3 = vcmask 523264   ;;  %v2097_v42 = vmov 5   ;;  %v2098_v43 = vmov 4  }
  0x84   :  { %1700 = vmatpush3.msra.mxu0 %v181_v0  ;;  %1706 = vmatprep.subr.mxu1 %v265_v4  ;;  %v361_v6 = vld [vmem:[#allocation6 + $0x8] sm:$0xff]  ;;  %v460_v11 = vld [vmem:[%s2406_s7 + $0x30] sm:$0xff]  ;;  %v459_v12 = vld [vmem:[%s2406_s7 + $0x28] sm:$0xff]  ;;  %v2099_v48 = vmov 6   ;;  %v2100_v49 = vmov 7   ;;  %v676_v54 = vshrl.u32 %v675_v52, 7 }
  0x85   :  { %1701 = vmatprep.subr.mxu0 %v180_v1  ;;  %1707 = vmatpush3.msra.mxu1 %v265_v4  ;;  %v461_v8 = vld [vmem:[%s2406_s7 + $0x38] sm:$0xff]  ;;  %v458_v13 = vld [vmem:[%s2406_s7 + $0x20] sm:$0xff]  ;;  %v456_v15 = vld [vmem:[%s2406_s7 + $0x10] sm:$0xff]  ;;  %s2422_s1 = sld [smem:[#allocation25_spill]]  ;;  %s2101_s21 = smov 112  }
  0x86   :  { %1702 = vmatpush3.msra.mxu0 %v180_v1  ;;  %1708 = vmatprep.subr.mxu1 %v264_v5  ;;  %v457_v14 = vld [vmem:[%s2406_s7 + $0x18] sm:$0xff]  ;;  %v455_v16 = vld [vmem:[%s2406_s7 + $0x8] sm:$0xff]  ;;  %v454_v17 = vld [vmem:[%s2406_s7] sm:$0xff]  ;;  %v677_v57 = vsub.s32 0, %v676_v54  ;;  %v721_v58 = vsub.s32 1, %v676_v54  ;;  %v933_v59 = vsub.s32 2, %v676_v54 }
  0x87   :  { %1709 = vmatpush3.msra.mxu1 %v264_v5  ;;  %1713 = vmatprep.subr.mxu0 %v361_v6  ;;  %v551_v18 = vld [vmem:[%s2407_s8 + $0x38] sm:$0xff]  ;;  %v550_v19 = vld [vmem:[%s2407_s8 + $0x30] sm:$0xff]  ;;  %v549_v20 = vld [vmem:[%s2407_s8 + $0x28] sm:$0xff]  ;;  %s2102_s22 = smov 96   ;;  %s2103_s23 = smov 80  }
  0x88   :  { %v2235_v2 = vld [vmem:[%s2421_s6] sm:$0xff]  ;;  %v2242_v3 = vld [vmem:[%s2421_s6 + $0x8] sm:$0xff]  ;;  %1720 = vmatprep.subr.mxu1 %v461_v8  ;;  %v547_v22 = vld [vmem:[%s2407_s8 + $0x18] sm:$0xff]  ;;  %1834 = vset.pattern.permute.xlu0 %v2097_v42  ;;  %s2104_s13 = smov 64  }
  0x89   :  { %1703 = vmatprep.mubr.msk.f32.mxu0 %vm182_vm0, %v2235_v2  ;;  %v548_v21 = vld [vmem:[%s2407_s8 + $0x20] sm:$0xff]  ;;  %v546_v23 = vld [vmem:[%s2407_s8 + $0x10] sm:$0xff]  ;;  %v545_v24 = vld [vmem:[%s2407_s8 + $0x8] sm:$0xff]  ;;  %1835 = vset.pattern.permute.xlu1 %v2098_v43 }
  0x8a   :  { %1704 = vmatmul.mubr.msk.f32.vlgmr.msra.gmra.mxu0 %vm182_vm0, %v2242_v3  ;;  %v544_v25 = vld [vmem:[%s2407_s8] sm:$0xff]  ;;  %v1603_v26 = vld [vmem:[#allocation4] ss:$0 sm:$0xff] }
  0x8b   :  { %1717 = vmatprep.mubr.msk.f32.mxu0 %vm182_vm0, %v180_v1  ;;  %1714 = vmatpush3.msra.mxu0 %v361_v6  ;;  %v1608_v38 = vld [vmem:[#allocation7] ss:$0 sm:$0xff] }
  0x8c   :  { %1715 = vmatprep.subr.mxu0 %v360_v7 }
  0x8d   :  { %1716 = vmatpush3.msra.mxu0 %v360_v7  ;;  %v179_v7 = vld [vmem:[%s2422_s1 + $0x8] sm:$0xff] }
  0x8e   :  { %1718 = vmatmul.mubr.msk.f32.vlgmr.msra.gmra.mxu0 %vm182_vm0, %v181_v0  ;;  %1739 = vmatprep.subr.mxu0 %v551_v18 }
  0x8f   :  { %1740 = vmatpush3.msra.mxu0 %v551_v18 }
  0x90   :  { %1741 = vmatprep.subr.mxu0 %v550_v19 }
  0x91   :  { %1742 = vmatpush3.msra.mxu0 %v550_v19 }
  0x92   :  { %1743 = vmatprep.subr.mxu0 %v549_v20 }
  0x93   :  { %1744 = vmatpush3.msra.mxu0 %v549_v20 }
  0x94   :  { %1745 = vmatprep.subr.mxu0 %v548_v21 }
  0x95   :  { %1746 = vmatpush3.msra.mxu0 %v548_v21 }
  0x96   :  { %1747 = vmatprep.subr.mxu0 %v547_v22 }
  0x97   :  { %1748 = vmatpush3.msra.mxu0 %v547_v22 }
  0x98   :  { %1749 = vmatprep.subr.mxu0 %v546_v23 }
  0x99   :  { %1750 = vmatpush3.msra.mxu0 %v546_v23 }
  0x9a   :  { %1751 = vmatprep.subr.mxu0 %v545_v24 }
  0x9b   :  { %1752 = vmatpush3.msra.mxu0 %v545_v24 }
  0x9c   :  { %1753 = vmatprep.subr.mxu0 %v544_v25 }
  0x9d   :  { %1754 = vmatpush3.msra.mxu0 %v544_v25  ;;  %v178_v25 = vld [vmem:[%s2422_s1] sm:$0xff] }
 0x14a   :  { %v1705_v9 = vpop.f32.mrf.mxu0 }
 0x14c   :  { %v255_v10 = vpop.f32.mrf.mxu0 }
 0x14d   :  { %1710 = vmatprep.mubr.msk.f32.mxu1 %vm182_vm0, %v255_v10  ;;  %v1066_v10 = vsub.s32 3, %v676_v54 }
 0x14e   :  { %1711 = vmatmul.mubr.msk.f32.vlgmr.msra.gmra.mxu1 %vm182_vm0, %v1705_v9  ;;  %v1719_v32 = vpop.f32.mrf.mxu0 }
 0x14f   :  { %1721 = vmatpush3.msra.mxu1 %v461_v8 }
 0x150   :  { %1722 = vmatprep.subr.mxu1 %v460_v11  ;;  %v434_v37 = vpop.f32.mrf.mxu0 }
 0x151   :  { %1723 = vmatpush3.msra.mxu1 %v460_v11 }
 0x152   :  { %1724 = vmatprep.subr.mxu1 %v459_v12 }
 0x153   :  { %1725 = vmatpush3.msra.mxu1 %v459_v12 }
 0x154   :  { %1726 = vmatprep.subr.mxu1 %v458_v13 }
 0x155   :  { %1727 = vmatpush3.msra.mxu1 %v458_v13 }
 0x156   :  { %1728 = vmatprep.subr.mxu1 %v457_v14 }
 0x157   :  { %1729 = vmatpush3.msra.mxu1 %v457_v14 }
 0x158   :  { %1730 = vmatprep.subr.mxu1 %v456_v15 }
 0x159   :  { %1731 = vmatpush3.msra.mxu1 %v456_v15 }
 0x15a   :  { %1732 = vmatprep.subr.mxu1 %v455_v16 }
 0x15b   :  { %1733 = vmatpush3.msra.mxu1 %v455_v16 }
 0x15c   :  { %1734 = vmatprep.subr.mxu1 %v454_v17 }
 0x15d   :  { %1735 = vmatpush3.msra.mxu1 %v454_v17 }
 0x20e   :  { %v1712_v27 = vpop.f32.mrf.mxu1 }
 0x20f   :  { %v351_v28 = vadd.f32 %v1712_v27, %v1603_v26 }
 0x210   :  { %v345_v29 = vpop.f32.mrf.mxu1 }
 0x211   :  { %v357_v30 = vmul.f32 0.01, %v351_v28  ;;  %v346_v31 = vadd.f32 %v1603_v26, %v345_v29  ;;  %vm355_vm1 = vcmp.gt.f32.partialorder %v351_v28, 0.0 }
 0x213   :  { %v356_v33 = vmul.f32 0.01, %v346_v31  ;;  %v359_v34 = vsel %vm355_vm1, %v351_v28, %v357_v30  ;;  %vm354_vm2 = vcmp.gt.f32.partialorder %v346_v31, 0.0  ;;  %vm1510_vm1 = vcmask 1043456  }
 0x214   :  { %v444_v35 = vadd.f32 %v1719_v32, %v359_v34 }
 0x215   :  { %v358_v36 = vsel %vm354_vm2, %v346_v31, %v356_v33  ;;  %vm1503_vm2 = vcmask 31744  }
 0x216   :  { %v443_v39 = vadd.f32 %v434_v37, %v358_v36  ;;  %v453_v41 = vadd.f32 %v1608_v38, %v444_v35 }
 0x218   :  { %v452_v40 = vadd.f32 %v1608_v38, %v443_v39 }
 0x21a   :  { %1736 = vmatprep.mubr.msk.f32.mxu1 %vm462_vm3, %v452_v40 }
 0x21b   :  { %1737 = vmatmul.mubr.msk.f32.vlgmr.msra.gmra.mxu1 %vm462_vm3, %v453_v41 }
 0x2db   :  { %v2298_v44 = vpop.f32.mrf.mxu1 }
 0x2dc   :  { %1765 = vmatprep.subr.mxu0 %v2298_v44 }
 0x2dd   :  { %v2301_v45 = vpop.f32.mrf.mxu1 }
 0x2de   :  { %1755 = vmatprep.mubr.msk.f32.mxu0 %vm462_vm3, %v2301_v45 }
 0x2df   :  { %1756 = vmatmul.mubr.msk.f32.vlgmr.msra.gmra.mxu0 %vm462_vm3, %v2298_v44 }
 0x2e0   :  { %1766 = vmatpush3.msra.mxu0 %v2298_v44 }
 0x2e1   :  { %1767 = vmatprep.subr.mxu0 %v2301_v45 }
 0x2e2   :  { %1768 = vmatpush3.msra.mxu0 %v2301_v45 }
 0x39f   :  { %v1757_v46 = vpop.f32.mrf.mxu0 }
 0x3a0   :  { %672 = vperm.xlu1 %1835, %v1757_v46   ;;  %716 = vperm.xlu0 %1834, %v1757_v46  }
 0x3a1   :  { %v624_v47 = vpop.f32.mrf.mxu0 }
 0x3a4   :  { %1836 = vset.pattern.permute.xlu1 %v2099_v48  ;;  %712 = vperm.xlu0 %1834, %v624_v47  }
 0x3a5   :  { %928 = vperm.xlu1 %1836, %v1757_v46  }
 0x3a8   :  { %1838 = vset.pattern.permute.xlu0 %v2099_v48 }
 0x3a9   :  { %1837 = vset.pattern.permute.xlu1 %v2098_v43  ;;  %924 = vperm.xlu0 %1838, %v624_v47  }
 0x3aa   :  { %667 = vperm.xlu1 %1837, %v624_v47  }
 0x3ad   :  { %1839 = vset.pattern.permute.xlu0 %v2100_v49 }
 0x3ae   :  { %1840 = vset.pattern.permute.xlu1 %v2100_v49  ;;  %1061 = vperm.xlu0 %1839, %v1757_v46  }
 0x3af   :  { %1057 = vperm.xlu1 %1840, %v624_v47  }
 0x3d8   :  { %633 = vxpose.xlu1.b32.start [1/2] (short) (narrow) %v624_v47, 8 }
 0x3dc   :  { %634 = vxpose.xlu1.b32.end [2/2] (short) (narrow) %v1757_v46, 8 }
 0x41b   :  { %v673_v50 = vpop.permute.xlu1 %672  ;;  %v717_v55 = vpop.permute.xlu0 %716 }
 0x41f   :  { %v713_v0 = vpop.permute.xlu0 %712 }
 0x420   :  { %v929_v51 = vpop.permute.xlu1 %928 }
 0x424   :  { %v925_v19 = vpop.permute.xlu0 %924 }
 0x425   :  { %v668_v53 = vpop.permute.xlu1 %667 }
 0x429   :  { %v1062_v33 = vpop.permute.xlu0 %1061 }
 0x42a   :  { %v1058_v56 = vpop.permute.xlu1 %1057 }
 0x454   :  { %v649_v60 = vpop.trf.xlu1 }
 0x455   :  { %v678_v61 = vrot.slane %v649_v60, %v677_v57  ;;  %v722_v62 = vrot.slane %v649_v60, %v721_v58  ;;  %v934_v63 = vrot.slane %v649_v60, %v933_v59  ;;  %v1067_v24 = vrot.slane %v649_v60, %v1066_v10 }
 0x457   :  { %v680_v1 = vadd.f32 %v678_v61, %v673_v50  ;;  %v723_v4 = vadd.f32 %v722_v62, %v713_v0  ;;  %v724_v5 = vadd.f32 %v722_v62, %v717_v55  ;;  %v936_v6 = vadd.f32 %v934_v63, %v929_v51 }
 0x458   :  { %v679_v12 = vadd.f32 %v678_v61, %v668_v53  ;;  %v935_v23 = vadd.f32 %v934_v63, %v925_v19  ;;  %v1068_v30 = vadd.f32 %v1067_v24, %v1058_v56  ;;  %v1069_v36 = vadd.f32 %v1067_v24, %v1062_v33 }
 0x459   :  { %vm682_vm4 = vcmp.gt.f32.partialorder %v680_v1, 0.0  ;;  %v684_v8 = vmul.f32 0.2, %v680_v1  ;;  %vm726_vm5 = vcmp.gt.f32.partialorder %v724_v5, 0.0  ;;  %v728_v9 = vmul.f32 0.2, %v724_v5 }
 0x45a   :  { %vm938_vm6 = vcmp.gt.f32.partialorder %v936_v6, 0.0  ;;  %v940_v11 = vmul.f32 0.2, %v936_v6  ;;  %v727_v15 = vmul.f32 0.2, %v723_v4  ;;  %vm725_vm7 = vcmp.gt.f32.partialorder %v723_v4, 0.0 }
 0x45b   :  { %v686_v13 = vsel %vm682_vm4, %v680_v1, %v684_v8  ;;  %v730_v14 = vsel %vm726_vm5, %v724_v5, %v728_v9  ;;  %v683_v27 = vmul.f32 0.2, %v679_v12  ;;  %vm681_vm8 = vcmp.gt.f32.partialorder %v679_v12, 0.0 }
 0x45c   :  { %v688_v16 = vadd.f32 %v686_v13, %v179_v7  ;;  %v732_v17 = vadd.f32 %v730_v14, %v179_v7  ;;  %v942_v18 = vsel %vm938_vm6, %v936_v6, %v940_v11  ;;  %v729_v26 = vsel %vm725_vm7, %v723_v4, %v727_v15 }
 0x45d   :  { %v944_v22 = vadd.f32 %v942_v18, %v179_v7  ;;  %v2317_v29 = vadd.f32 %v729_v26, %v178_v25  ;;  %v685_v31 = vsel %vm681_vm8, %v679_v12, %v683_v27  ;;  %v939_v32 = vmul.f32 0.2, %v935_v23 }
 0x45e   :  { %v692_v20 = vsel %vm182_vm0, %v688_v16, -inf  ;;  %v736_v21 = vsel %vm182_vm0, %v732_v17, -inf  ;;  %vm937_vm9 = vcmp.gt.f32.partialorder %v935_v23, 0.0  ;;  %v2321_v35 = vadd.f32 %v685_v31, %v178_v25 }
 0x45f   :  { %693 = vmax.xlane.f32.xlu1 %v692_v20  ;;  %737 = vmax.xlane.f32.xlu0 %v736_v21  ;;  %v948_v28 = vsel %vm182_vm0, %v944_v22, -inf  ;;  %v733_v34 = vsel %vm182_vm0, %v2317_v29, -inf  ;;  %v941_v37 = vsel %vm937_vm9, %v935_v23, %v939_v32  ;;  %v1072_v38 = vmul.f32 0.2, %v1068_v30 }
 0x460   :  { %vm1070_vm10 = vcmp.gt.f32.partialorder %v1068_v30, 0.0  ;;  %v689_v39 = vsel %vm182_vm0, %v2321_v35, -inf  ;;  %v2325_v40 = vadd.f32 %v941_v37, %v178_v25  ;;  %v1073_v42 = vmul.f32 0.2, %v1069_v36 }
 0x461   :  { %v1074_v41 = vsel %vm1070_vm10, %v1068_v30, %v1072_v38  ;;  %vm1071_vm11 = vcmp.gt.f32.partialorder %v1069_v36, 0.0 }
 0x462   :  { %v945_v43 = vsel %vm182_vm0, %v2325_v40, -inf  ;;  %v1076_v46 = vadd.f32 %v1074_v41, %v178_v25  ;;  %v1075_v47 = vsel %vm1071_vm11, %v1069_v36, %v1073_v42 }
 0x463   :  { %949 = vmax.xlane.f32.xlu0 %v948_v28  ;;  %v1077_v49 = vadd.f32 %v1075_v47, %v179_v7 }
 0x464   :  { %v1078_v48 = vsel %vm182_vm0, %v1076_v46, -inf }
 0x465   :  { %v1081_v50 = vsel %vm182_vm0, %v1077_v49, -inf }
 0x467   :  { %734 = vmax.xlane.f32.xlu0 %v733_v34 }
 0x46b   :  { %690 = vmax.xlane.f32.xlu0 %v689_v39 }
 0x46f   :  { %946 = vmax.xlane.f32.xlu0 %v945_v43 }
 0x470   :  { %757 = vrot.lane.b32.xlu1 %v2298_v44, %s2101_s21 }
 0x473   :  { %1079 = vmax.xlane.f32.xlu0 %v1078_v48 }
 0x474   :  { %969 = vrot.lane.b32.xlu1 %v2298_v44, %s2102_s22 }
 0x477   :  { %1082 = vmax.xlane.f32.xlu0 %v1081_v50 }
 0x478   :  { %967 = vrot.lane.b32.xlu1 %v2301_v45, %s2102_s22 }
 0x48d   :  { %755 = vrot.lane.b32.xlu0 %v2301_v45, %s2101_s21 }
 0x4e8   :  { %v694_v51 = vpop.xlane.xlu1 %693  ;;  %v738_v52 = vpop.xlane.xlu0 %737 }
 0x4e9   :  { %v696_v53 = vsub.f32 %v688_v16, %v694_v51  ;;  %v740_v54 = vsub.f32 %v732_v17, %v738_v52 }
 0x4eb   :  { %v743_v55 = vmul.f32 1.442695, %v740_v54  ;;  %v699_v56 = vmul.f32 1.442695, %v696_v53 }
 0x4ec   :  { %v758_v57 = vpop.permute.xlu1 %757  ;;  %v950_v58 = vpop.xlane.xlu0 %949 }
 0x4ed   :  { %v952_v59 = vsub.f32 %v944_v22, %v950_v58  ;;  %1758 = vmatprep.subr.mxu1 %v758_v57  ;;  %1841 = vpow2.f32 %v743_v55 }
 0x4ee   :  { %1759 = vmatpush3.msra.mxu1 %v758_v57  ;;  %1843 = vpow2.f32 %v699_v56 }
 0x4ef   :  { %v955_v60 = vmul.f32 1.442695, %v952_v59  ;;  %v1231_v59 = vld [vmem:[%s2411_s12 + $0x8] sm:$0xff] }
 0x4f0   :  { %v735_v61 = vpop.xlane.xlu0 %734  ;;  %v970_v18 = vpop.permute.xlu1 %969 }
 0x4f1   :  { %1845 = vpow2.f32 %v955_v60  ;;  %v739_v7 = vsub.f32 %v2317_v29, %v735_v61  ;;  %v1230_v60 = vld [vmem:[%s2411_s12] sm:$0xff]  ;;  %s2105_s12 = smov 124  }
 0x4f3   :  { %v741_v13 = vmul.f32 1.442695, %v739_v7 }
 0x4f4   :  { %v691_v62 = vpop.xlane.xlu0 %690  ;;  %v968_v36 = vpop.permute.xlu1 %967 }
 0x4f5   :  { %v695_v14 = vsub.f32 %v2321_v35, %v691_v62 }
 0x4f7   :  { %v697_v19 = vmul.f32 1.442695, %v695_v14 }
 0x4f8   :  { %v947_v63 = vpop.xlane.xlu0 %946 }
 0x4f9   :  { %v951_v20 = vsub.f32 %v2325_v40, %v947_v63 }
 0x4fa   :  { %v2335_v0 = vpop.eup %1841 }
 0x4fb   :  { %v748_v1 = vsel %vm182_vm0, %v2335_v0, 0.0  ;;  %v2339_v5 = vpop.eup %1843  ;;  %v953_v21 = vmul.f32 1.442695, %v951_v20 }
 0x4fc   :  { %v1080_v4 = vpop.xlane.xlu0 %1079  ;;  %749 = vadd.xlane.f32.xlu0 %v748_v1  ;;  %v704_v9 = vsel %vm182_vm0, %v2339_v5, 0.0 }
 0x4fd   :  { %v1084_v6 = vsub.f32 %v1076_v46, %v1080_v4 }
 0x4fe   :  { %v2344_v11 = vpop.eup %1845 }
 0x4ff   :  { %v1086_v8 = vmul.f32 1.442695, %v1084_v6  ;;  %v960_v16 = vsel %vm182_vm0, %v2344_v11, 0.0 }
 0x500   :  { %v1083_v10 = vpop.xlane.xlu0 %1082  ;;  %705 = vadd.xlane.f32.xlu0 %v704_v9 }
 0x501   :  { %1847 = vpow2.f32 %v1086_v8  ;;  %v1085_v12 = vsub.f32 %v1077_v49, %v1083_v10  ;;  %v1621_v8 = vld [vmem:[#allocation9] ss:$0 sm:$0xff] }
 0x503   :  { %v1088_v15 = vmul.f32 1.442695, %v1085_v12  ;;  %v1622_v12 = vld [vmem:[#allocation10] ss:$0 sm:$0xff] }
 0x504   :  { %v756_v17 = vpop.permute.xlu0 %755  ;;  %961 = vadd.xlane.f32.xlu0 %v960_v16 }
 0x505   :  { %1849 = vpow2.f32 %v1088_v15  ;;  %1760 = vmatprep.subr.mxu1 %v756_v17 }
 0x506   :  { %1761 = vmatpush3.msra.mxu1 %v756_v17  ;;  %1851 = vpow2.f32 %v741_v13 }
 0x507   :  { %1772 = vmatprep.subr.mxu1 %v970_v18  ;;  %1853 = vpow2.f32 %v697_v19 }
 0x508   :  { %1855 = vpow2.f32 %v953_v21 }
 0x50e   :  { %v1848_v22 = vpop.eup %1847 }
 0x50f   :  { %v1090_v23 = vsel %vm182_vm0, %v1848_v22, 0.0 }
 0x510   :  { %1091 = vadd.xlane.f32.xlu1 %v1090_v23 }
 0x512   :  { %v2351_v24 = vpop.eup %1849 }
 0x513   :  { %v1093_v25 = vsel %vm182_vm0, %v2351_v24, 0.0  ;;  %v1852_v26 = vpop.eup %1851 }
 0x514   :  { %1094 = vadd.xlane.f32.xlu0 %v1093_v25  ;;  %v745_v27 = vsel %vm182_vm0, %v1852_v26, 0.0  ;;  %v1854_v28 = vpop.eup %1853 }
 0x515   :  { %v701_v29 = vsel %vm182_vm0, %v1854_v28, 0.0  ;;  %v1856_v30 = vpop.eup %1855 }
 0x516   :  { %v957_v31 = vsel %vm182_vm0, %v1856_v30, 0.0 }
 0x518   :  { %746 = vadd.xlane.f32.xlu0 %v745_v27  ;;  %v1623_v27 = vld [vmem:[#allocation12] ss:$0 sm:$0xff] }
 0x51c   :  { %702 = vadd.xlane.f32.xlu0 %v701_v29 }
 0x520   :  { %958 = vadd.xlane.f32.xlu0 %v957_v31 }
 0x521   :  { %1100 = vrot.lane.b32.xlu1 %v2301_v45, %s2103_s23 }
 0x525   :  { %1215 = vrot.lane.b32.xlu1 %v2298_v44, %s2104_s13 }
 0x536   :  { %1102 = vrot.lane.b32.xlu0 %v2298_v44, %s2103_s23 }
 0x53a   :  { %1213 = vrot.lane.b32.xlu0 %v2301_v45, %s2104_s13 }
 0x585   :  { %v750_v32 = vpop.xlane.xlu0 %749 }
 0x586   :  { %1857 = vrcp.f32 %v750_v32  ;;  %v1626_v32 = vld [vmem:[#allocation13] ss:$0 sm:$0xff] }
 0x589   :  { %v706_v33 = vpop.xlane.xlu0 %705 }
 0x58d   :  { %v962_v34 = vpop.xlane.xlu0 %961 }
 0x593   :  { %v1858_v41 = vpop.eup %1857 }
 0x594   :  { %v754_v46 = vmul.f32 %v1858_v41, %v2335_v0 }
 0x599   :  { %v1092_v38 = vpop.xlane.xlu1 %1091 }
 0x59d   :  { %v1095_v35 = vpop.xlane.xlu0 %1094  ;;  %v1101_v55 = vpop.permute.xlu1 %1100 }
 0x5a1   :  { %v747_v37 = vpop.xlane.xlu0 %746 }
 0x5a2   :  { %1859 = vrcp.f32 %v747_v37 }
 0x5a3   :  { %1861 = vrcp.f32 %v706_v33 }
 0x5a4   :  { %1863 = vrcp.f32 %v1092_v38 }
 0x5a5   :  { %v703_v39 = vpop.xlane.xlu0 %702 }
 0x5a6   :  { %1865 = vrcp.f32 %v703_v39 }
 0x5a7   :  { %1867 = vrcp.f32 %v962_v34 }
 0x5a8   :  { %1869 = vrcp.f32 %v1095_v35 }
 0x5a9   :  { %v959_v40 = vpop.xlane.xlu0 %958 }
 0x5aa   :  { %1871 = vrcp.f32 %v959_v40  ;;  %v1629_v40 = vld [vmem:[#allocation15] ss:$0 sm:$0xff] }
 0x5ad   :  { %v1103_v44 = vpop.permute.xlu0 %1102 }
 0x5ae   :  { %1779 = vmatprep.subr.mxu0 %v1103_v44 }
 0x5af   :  { %v1860_v45 = vpop.eup %1859 }
 0x5b0   :  { %v753_v42 = vmul.f32 %v1860_v45, %v1852_v26  ;;  %v1862_v43 = vpop.eup %1861 }
 0x5b1   :  { %v1864_v47 = vpop.eup %1863  ;;  %v710_v51 = vmul.f32 %v1862_v43, %v2339_v5  ;;  %v1214_v23 = vpop.permute.xlu0 %1213 }
 0x5b2   :  { %1762 = vmatprep.mubr.msk.f32.mxu1 %vm182_vm0, %v753_v42  ;;  %v1098_v53 = vmul.f32 %v1864_v47, %v1848_v22  ;;  %v1216_v22 = vpop.permute.xlu1 %1215  ;;  %v1495_v47 = vld [vmem:[%s2414_s15] sm:$0xf] }
 0x5b3   :  { %v1866_v48 = vpop.eup %1865  ;;  %1763 = vmatmul.mubr.msk.f32.vlgmr.msra.gmra.mxu1 %vm182_vm0, %v754_v46 }
 0x5b4   :  { %1773 = vmatpush3.msra.mxu1 %v970_v18  ;;  %v709_v49 = vmul.f32 %v1866_v48, %v1854_v28  ;;  %v1868_v50 = vpop.eup %1867 }
 0x5b5   :  { %1774 = vmatprep.subr.mxu1 %v968_v36  ;;  %v1870_v52 = vpop.eup %1869  ;;  %v966_v57 = vmul.f32 %v1868_v50, %v2344_v11  ;;  %v1632_v50 = vld [vmem:[#allocation16] ss:$0 sm:$0xff] }
 0x5b6   :  { %1775 = vmatpush3.msra.mxu1 %v968_v36  ;;  %1769 = vmatprep.mubr.msk.f32.mxu0 %vm182_vm0, %v709_v49  ;;  %v1099_v58 = vmul.f32 %v1870_v52, %v2351_v24 }
 0x5b7   :  { %v1872_v54 = vpop.eup %1871  ;;  %1770 = vmatmul.mubr.msk.f32.vlgmr.msra.gmra.mxu0 %vm182_vm0, %v710_v51  ;;  %1786 = vmatprep.subr.mxu1 %v1231_v59 }
 0x5b8   :  { %1780 = vmatpush3.msra.mxu0 %v1103_v44  ;;  %1783 = vmatprep.mubr.msk.f32.mxu0 %vm182_vm0, %v1098_v53  ;;  %v965_v56 = vmul.f32 %v1872_v54, %v1856_v30 }
 0x5b9   :  { %1781 = vmatprep.subr.mxu0 %v1101_v55 }
 0x5ba   :  { %1782 = vmatpush3.msra.mxu0 %v1101_v55  ;;  %1776 = vmatprep.mubr.msk.f32.mxu1 %vm182_vm0, %v965_v56 }
 0x5bb   :  { %1777 = vmatmul.mubr.msk.f32.vlgmr.msra.gmra.mxu1 %vm182_vm0, %v966_v57  ;;  %1784 = vmatmul.mubr.msk.f32.vlgmr.msra.gmra.mxu0 %vm182_vm0, %v1099_v58 }
 0x5bc   :  { %1797 = vmatprep.mubr.msk.f32.mxu0 %vm182_vm0, %v2235_v2  ;;  %1787 = vmatpush3.msra.mxu1 %v1231_v59 }
 0x5bd   :  { %1788 = vmatprep.subr.mxu1 %v1230_v60 }
 0x5be   :  { %1789 = vmatpush3.msra.mxu1 %v1230_v60 }
 0x673   :  { %v1764_v61 = vpop.f32.mrf.mxu1 }
 0x675   :  { %v833_v63 = vpop.f32.mrf.mxu1 }
 0x677   :  { %v1771_v62 = vpop.f32.mrf.mxu0 }
 0x678   :  { %v920_v1 = vadd.f32 %v1771_v62, %v1764_v61 }
 0x679   :  { %v914_v0 = vpop.f32.mrf.mxu0 }
 0x67a   :  { %v915_v6 = vadd.f32 %v914_v0, %v833_v63 }
 0x67b   :  { %v1778_v4 = vpop.f32.mrf.mxu1  ;;  %v1785_v5 = vpop.f32.mrf.mxu0 }
 0x67c   :  { %v1055_v7 = vadd.f32 %v1778_v4, %v920_v1 }
 0x67d   :  { %v1045_v9 = vpop.f32.mrf.mxu1  ;;  %v1178_v13 = vpop.f32.mrf.mxu0 }
 0x67e   :  { %v1188_v10 = vadd.f32 %v1785_v5, %v1055_v7  ;;  %v1054_v11 = vadd.f32 %v1045_v9, %v915_v6 }
 0x680   :  { %v1197_v14 = vmul.f32 %v1621_v8, %v1188_v10  ;;  %v1187_v15 = vadd.f32 %v1178_v13, %v1054_v11 }
 0x682   :  { %v1206_v16 = vadd.f32 %v1622_v12, %v1197_v14  ;;  %v1196_v17 = vmul.f32 %v1621_v8, %v1187_v15 }
 0x684   :  { %vm1208_vm12 = vcmp.gt.f32.partialorder %v1206_v16, 0.0  ;;  %v1210_v18 = vmul.f32 0.01, %v1206_v16  ;;  %v1205_v19 = vadd.f32 %v1622_v12, %v1196_v17 }
 0x686   :  { %v1212_v20 = vsel %vm1208_vm12, %v1206_v16, %v1210_v18  ;;  %vm1207_vm13 = vcmp.gt.f32.partialorder %v1205_v19, 0.0  ;;  %v1209_v21 = vmul.f32 0.01, %v1205_v19 }
 0x687   :  { %v1220_v24 = vadd.f32 %v1216_v22, %v1212_v20 }
 0x688   :  { %v1211_v25 = vsel %vm1207_vm13, %v1205_v19, %v1209_v21 }
 0x689   :  { %v1219_v26 = vadd.f32 %v1214_v23, %v1211_v25  ;;  %v1229_v29 = vadd.f32 %v1623_v27, %v1220_v24 }
 0x68b   :  { %v1228_v28 = vadd.f32 %v1623_v27, %v1219_v26 }
 0x68d   :  { %1790 = vmatprep.mubr.msk.f32.mxu1 %vm182_vm0, %v1228_v28 }
 0x68e   :  { %1791 = vmatmul.mubr.msk.f32.vlgmr.msra.gmra.mxu1 %vm182_vm0, %v1229_v29 }
 0x68f   :  { %1804 = vmatprep.mubr.msk.f32.mxu1 %vm182_vm0, %v2235_v2 }
 0x74e   :  { %v1792_v30 = vpop.f32.mrf.mxu1 }
 0x74f   :  { %1405 = vrot.lane.b32.xlu0 %v1792_v30, %s2105_s12  ;;  %1793 = vmatprep.subr.mxu0 %v1792_v30 }
 0x750   :  { %v1304_v31 = vpop.f32.mrf.mxu1  ;;  %1794 = vmatpush3.msra.mxu0 %v1792_v30 }
 0x751   :  { %1403 = vrot.lane.b32.xlu1 %v1304_v31, %s2105_s12  ;;  %1795 = vmatprep.subr.mxu0 %v1304_v31 }
 0x752   :  { %1796 = vmatpush3.msra.mxu0 %v1304_v31 }
 0x753   :  { %1798 = vmatmul.mubr.msk.f32.vlgmr.msra.gmra.mxu0 %vm182_vm0, %v2242_v3  ;;  %1807 = vmatprep.subr.msk.mxu0 %vm1510_vm1, %v1495_v47 }
 0x754   :  { %1808 = vmatpush3.msk.msra.mxu0 %vm1510_vm1, %v1495_v47 }
 0x7c1   :  { %v1406_v2 = vpop.permute.xlu0 %1405 }
 0x7c3   :  { %v1404_v41 = vpop.permute.xlu1 %1403 }
 0x813   :  { %v1799_v33 = vpop.f32.mrf.mxu0 }
 0x814   :  { %v1392_v34 = vadd.f32 %v1799_v33, %v1626_v32 }
 0x815   :  { %v1386_v35 = vpop.f32.mrf.mxu0 }
 0x816   :  { %vm1396_vm14 = vcmp.gt.f32.partialorder %v1392_v34, 0.0  ;;  %v1398_v36 = vmul.f32 0.01, %v1392_v34  ;;  %v1387_v37 = vadd.f32 %v1626_v32, %v1386_v35 }
 0x818   :  { %v1400_v38 = vsel %vm1396_vm14, %v1392_v34, %v1398_v36  ;;  %vm1395_vm15 = vcmp.gt.f32.partialorder %v1387_v37, 0.0  ;;  %v1397_v39 = vmul.f32 0.01, %v1387_v37 }
 0x819   :  { %v1410_v44 = vadd.f32 %v1406_v2, %v1400_v38 }
 0x81a   :  { %v1399_v45 = vsel %vm1395_vm15, %v1387_v37, %v1397_v39 }
 0x81b   :  { %v1419_v42 = vadd.f32 %v1629_v40, %v1410_v44  ;;  %v1409_v43 = vadd.f32 %v1404_v41, %v1399_v45 }
 0x81d   :  { %1800 = vmatprep.subr.mxu1 %v1419_v42  ;;  %v1418_v46 = vadd.f32 %v1629_v40, %v1409_v43 }
 0x81e   :  { %1801 = vmatpush3.msra.mxu1 %v1419_v42 }
 0x81f   :  { %1802 = vmatprep.subr.mxu1 %v1418_v46 }
 0x820   :  { %1803 = vmatpush3.msra.mxu1 %v1418_v46 }
 0x821   :  { %1805 = vmatmul.mubr.msk.f32.vlgmr.msra.gmra.mxu1 %vm182_vm0, %v2242_v3 }
 0x8e1   :  { %v1806_v48 = vpop.f32.mrf.mxu1 }
 0x8e3   :  { %v1486_v49 = vpop.f32.mrf.mxu1 }
 0x8e4   :  { %1809 = vmatprep.mubr.msk.f32.mxu0 %vm1503_vm2, %v1486_v49 }
 0x8e5   :  { %1810 = vmatmul.mubr.msk.f32.vlgmr.msra.gmra.mxu0 %vm1503_vm2, %v1806_v48 }
 0x9a5   :  { %v1811_v51 = vpop.f32.mrf.mxu0 }
 0x9a6   :  { %v1586_v52 = vadd.f32 %v1811_v51, %v1632_v50 }
 0x9a7   :  { %v1580_v53 = vpop.f32.mrf.mxu0 }
 0x9a8   :  { %1590 = vst [vmem:[%s2416_s17 + $0x8] sm:$0xff] %v1586_v52  ;;  %v1581_v3 = vadd.f32 %v1632_v50, %v1580_v53 }
 0x9aa   :  { %1589 = vst [vmem:[%s2416_s17] sm:$0xff] %v1581_v3 }
 0x9ab   :  { %1595 = vsyncpa [#allocation3], 1 }
 0x9ac   :  { %1596 = vsyncpa [#allocation5], 1 }
 0x9ad   :  { %1597 = vsyncpa [#allocation8], 1 }
 0x9ae   :  { %1598 = vsyncpa [#allocation11], 1 }
 0x9af   :  { %1599 = vsyncpa [#allocation14], 1 }
 0x9b0   :  { %1600 = vsyncpa [#allocation17], 1 }

</bundles_post_ra>
